<compile_context>
chip_gen: v6e
topology: v6e:2x2x1
jax: 0.10.0
libtpu: 0.0.40
codegen_flags: <defaults>
</compile_context>

<pallas_src>
import functools

import jax
import jax.numpy as jnp
from jax.experimental import pallas as pl
from jax.experimental.pallas import tpu as pltpu

LN_EPS = 1e-5
INV_SQRT2 = 0.7071067811865476
NEG_INF = -1e30

_VMEM_LIMIT_CACHE = None


def _vmem_limit_bytes():
    """~75% of physical per-core VMEM (96 MiB on v5e/v6e, 48 MiB on v7x)."""
    global _VMEM_LIMIT_CACHE
    if _VMEM_LIMIT_CACHE is None:
        try:
            cap = int(pltpu.get_tpu_info().vmem_capacity_bytes)
        except Exception:
            cap = 0
        if cap <= 0:
            cap = 128 * 1024 * 1024
        _VMEM_LIMIT_CACHE = min((cap * 3) // 4, 100 * 1024 * 1024)
    return _VMEM_LIMIT_CACHE


def _round_up(n, m):
    return ((n + m - 1) // m) * m


def _layernorm(z, g, b):
    mu = jnp.mean(z, axis=-1, keepdims=True)
    var = jnp.mean((z - mu) ** 2, axis=-1, keepdims=True)
    return (z - mu) * jax.lax.rsqrt(var + LN_EPS) * g + b


def _gelu_exact(x):
    # exact erf GELU (PyTorch nn.GELU default)
    return 0.5 * x * (1.0 + jax.lax.erf(x * INV_SQRT2))


# ----------------------------- kernels --------------------------------------


def patch_embed_kernel(p_ref, w_ref, b_ref, cls_ref, pos_ref, o_ref):
    # p_ref: (1, P, C*p*p) bf16   w_ref: (C*p*p, D) bf16   b_ref: (1, D) f32
    # cls_ref: (1, 1, D) f32      pos_ref: (1, N, D) f32   o_ref: (1, Npad, D) f32
    n_pad, d = o_ref.shape[1], o_ref.shape[2]
    n_real = pos_ref.shape[1]
    proj = jnp.dot(p_ref[0], w_ref[...], preferred_element_type=jnp.float32) + b_ref[...]
    rows = jnp.concatenate([cls_ref[0], proj], axis=0) + pos_ref[0]
    if n_pad > n_real:  # static: zero-fill padded token rows
        rows = jnp.concatenate(
            [rows, jnp.zeros((n_pad - n_real, d), jnp.float32)], axis=0)
    o_ref[0] = rows  # single aligned full-block store


def vit_layer_kernel(x_ref, ln1g_ref, ln1b_ref, wqkv_ref, bqkv_ref,
                     wproj_ref, bproj_ref, ln2g_ref, ln2b_ref,
                     w1_ref, b1_ref, w2_ref, b2_ref, lnfg_ref, lnfb_ref,
                     o_ref, *, num_heads, head_dim, n_real):
    """One transformer block per (batch, layer) grid step; residual stream is
    the VMEM-resident output block (constant index across the depth axis)."""
    l = pl.program_id(1)
    n_pad = o_ref.shape[1]
    d = num_heads * head_dim

    @pl.when(l == 0)
    def _init_residual():
        o_ref[...] = x_ref[...]

    x = o_ref[0]                                            # (Npad, D) f32

    # -------- attention --------
    h = _layernorm(x, ln1g_ref[0], ln1b_ref[0])
    # scale 1/sqrt(head_dim) is pre-folded into the Q columns of wqkv / bqkv
    qkv = jnp.dot(h.astype(jnp.bfloat16), wqkv_ref[0],
                  preferred_element_type=jnp.float32) + bqkv_ref[0]

    if n_real < n_pad:  # static: padded keys must not receive attention weight
        key_ok = jax.lax.broadcasted_iota(jnp.int32, (n_pad, n_pad), 1) < n_real

    ctx_heads = []
    for hi in range(num_heads):                             # static unroll over heads
        lo = hi * head_dim
        q = qkv[:, lo:lo + head_dim].astype(jnp.bfloat16)
        k = qkv[:, d + lo:d + lo + head_dim].astype(jnp.bfloat16)
        v = qkv[:, 2 * d + lo:2 * d + lo + head_dim].astype(jnp.bfloat16)
        # contract on the last dims -> no explicit (XLU) transpose of K
        s = jax.lax.dot_general(q, k, (((1,), (1,)), ((), ())),
                                preferred_element_type=jnp.float32)
        if n_real < n_pad:
            s = jnp.where(key_ok, s, NEG_INF)
        m = jnp.max(s, axis=-1, keepdims=True)
        e = jnp.exp(s - m)
        denom = jnp.sum(e, axis=-1, keepdims=True)
        pv = jnp.dot(e.astype(jnp.bfloat16), v, preferred_element_type=jnp.float32)
        # deferred softmax normalization via approximate reciprocal (EUP slot)
        ctx_heads.append((pv * pl.reciprocal(denom, approx=True)).astype(jnp.bfloat16))

    # one lane-dense (Npad, D) context; single full-K projection matmul
    ctx = jnp.concatenate(ctx_heads, axis=-1) if num_heads > 1 else ctx_heads[0]
    attn_out = jnp.dot(ctx, wproj_ref[0],
                       preferred_element_type=jnp.float32) + bproj_ref[0]
    x = x + attn_out

    # -------- MLP (full Npad token rows -> no M=8 matmul tiles) --------
    h2 = _layernorm(x, ln2g_ref[0], ln2b_ref[0])
    mh = jnp.dot(h2.astype(jnp.bfloat16), w1_ref[0],
                 preferred_element_type=jnp.float32) + b1_ref[0]
    mh = _gelu_exact(mh)
    mlp_out = jnp.dot(mh.astype(jnp.bfloat16), w2_ref[0],
                      preferred_element_type=jnp.float32) + b2_ref[0]
    x = x + mlp_out

    o_ref[0] = x

    @pl.when(l == pl.num_programs(1) - 1)                   # fused final LayerNorm
    def _final_ln():
        o_ref[0] = _layernorm(x, lnfg_ref[...], lnfb_ref[...])


# ----------------------------- wrappers -------------------------------------


def run_patch_embed(patches, w, b, cls_tok, pos, n_pad):
    B, P, Cpp = patches.shape
    D = w.shape[1]
    N = pos.shape[1]
    return pl.pallas_call(
        patch_embed_kernel,
        out_shape=jax.ShapeDtypeStruct((B, n_pad, D), jnp.float32),
        grid=(B,),
        in_specs=[
            pl.BlockSpec((1, P, Cpp), lambda i: (i, 0, 0)),
            pl.BlockSpec((Cpp, D), lambda i: (0, 0)),
            pl.BlockSpec((1, D), lambda i: (0, 0)),
            pl.BlockSpec((1, 1, D), lambda i: (0, 0, 0)),
            pl.BlockSpec((1, N, D), lambda i: (0, 0, 0)),
        ],
        out_specs=pl.BlockSpec((1, n_pad, D), lambda i: (i, 0, 0)),
        compiler_params=pltpu.CompilerParams(
            dimension_semantics=("parallel",), vmem_limit_bytes=_vmem_limit_bytes()),
    )(patches, w, b, cls_tok, pos)


def run_vit_layers(x, layers, lnf_g, lnf_b, *, num_heads, n_real):
    """Fused transformer stack: grid=(B, depth); weights stacked over depth so
    layer l+1 weights are auto-prefetched (double-buffered) during layer l."""
    B, Npad, D = x.shape
    depth = layers["wqkv"].shape[0]
    Hd = layers["w1"].shape[-1]
    assert D % num_heads == 0
    kern = functools.partial(vit_layer_kernel, num_heads=num_heads,
                             head_dim=D // num_heads, n_real=n_real)

    resid = lambda b, l: (b, 0, 0)      # constant across depth -> VMEM-resident
    per_layer = lambda b, l: (l, 0, 0)  # changes with depth -> pipelined prefetch
    const2 = lambda b, l: (0, 0)

    return pl.pallas_call(
        kern,
        out_shape=jax.ShapeDtypeStruct((B, Npad, D), jnp.float32),
        grid=(B, depth),
        in_specs=[
            pl.BlockSpec((1, Npad, D), resid),        # initial tokens
            pl.BlockSpec((1, 1, D), per_layer),       # ln1 gamma
            pl.BlockSpec((1, 1, D), per_layer),       # ln1 beta
            pl.BlockSpec((1, D, 3 * D), per_layer),   # Wqkv (bf16, Q cols pre-scaled)
            pl.BlockSpec((1, 1, 3 * D), per_layer),   # bqkv (Q part pre-scaled)
            pl.BlockSpec((1, D, D), per_layer),       # Wproj (bf16)
            pl.BlockSpec((1, 1, D), per_layer),       # bproj
            pl.BlockSpec((1, 1, D), per_layer),       # ln2 gamma
            pl.BlockSpec((1, 1, D), per_layer),       # ln2 beta
            pl.BlockSpec((1, D, Hd), per_layer),      # W1 (bf16)
            pl.BlockSpec((1, 1, Hd), per_layer),      # b1
            pl.BlockSpec((1, Hd, D), per_layer),      # W2 (bf16)
            pl.BlockSpec((1, 1, D), per_layer),       # b2
            pl.BlockSpec((1, D), const2),             # final LN gamma
            pl.BlockSpec((1, D), const2),             # final LN beta
        ],
        out_specs=pl.BlockSpec((1, Npad, D), resid),
        compiler_params=pltpu.CompilerParams(
            dimension_semantics=("parallel", "arbitrary"),
            vmem_limit_bytes=_vmem_limit_bytes()),
    )(x, layers["ln1_g"], layers["ln1_b"], layers["wqkv"], layers["bqkv"],
      layers["wproj"], layers["bproj"], layers["ln2_g"], layers["ln2_b"],
      layers["w1"], layers["b1"], layers["w2"], layers["b2"], lnf_g, lnf_b)


# ----------------------------- glue / model ---------------------------------


def extract_patches(x, p):
    """NCHW -> (B, num_patches, C*p*p); patch order row-major over (h, w),
    per-patch flattening order (C, ph, pw) to match Conv2d(kernel=stride=p)."""
    B, C, H, W = x.shape
    x = x.reshape(B, C, H // p, p, W // p, p)
    x = x.transpose(0, 2, 4, 1, 3, 5)
    return x.reshape(B, (H // p) * (W // p), C * p * p)


def init_params(key, *, in_channels, patch_size, img_size, embed_dim, depth,
                num_heads, mlp_ratio):
    D = embed_dim
    Cpp = in_channels * patch_size * patch_size
    num_patches = (img_size // patch_size) ** 2
    N = num_patches + 1
    hidden = int(D * mlp_ratio)
    keys = jax.random.split(key, 4 + depth)

    params = {
        "w_patch": jax.random.normal(keys[0], (Cpp, D), jnp.float32) * 0.02,
        "b_patch": jnp.zeros((1, D), jnp.float32),
        "cls": jax.random.normal(keys[1], (1, 1, D), jnp.float32) * 0.02,
        "pos": jax.random.normal(keys[2], (1, N, D), jnp.float32) * 0.02,
        "ln_f_g": jnp.ones((1, D), jnp.float32),
        "ln_f_b": jnp.zeros((1, D), jnp.float32),
        "blocks": [],
    }
    for d in range(depth):
        bk = jax.random.split(keys[4 + d], 4)
        params["blocks"].append({
            "ln1_g": jnp.ones((1, D), jnp.float32),
            "ln1_b": jnp.zeros((1, D), jnp.float32),
            "wqkv": jax.random.normal(bk[0], (D, 3 * D), jnp.float32) * 0.02,
            "bqkv": jnp.zeros((1, 3 * D), jnp.float32),
            "wproj": jax.random.normal(bk[1], (D, D), jnp.float32) * 0.02,
            "bproj": jnp.zeros((1, D), jnp.float32),
            "ln2_g": jnp.ones((1, D), jnp.float32),
            "ln2_b": jnp.zeros((1, D), jnp.float32),
            "w1": jax.random.normal(bk[2], (D, hidden), jnp.float32) * 0.02,
            "b1": jnp.zeros((1, hidden), jnp.float32),
            "w2": jax.random.normal(bk[3], (hidden, D), jnp.float32) * 0.02,
            "b2": jnp.zeros((1, D), jnp.float32),
        })
    return params


def prepare_params(params, *, num_heads):
    """Stack per-layer params over a leading depth axis, fold 1/sqrt(head_dim)
    into the Q columns of Wqkv/bqkv, store matmul weights in bf16."""
    D = params["w_patch"].shape[1]
    scale = (D // num_heads) ** -0.5
    blocks = params["blocks"]

    def stack(name):
        return jnp.stack([blk[name] for blk in blocks], axis=0)

    wqkv = stack("wqkv").at[:, :, :D].multiply(scale)       # (depth, D, 3D)
    bqkv = stack("bqkv").at[:, :, :D].multiply(scale)       # (depth, 1, 3D)

    return {
        "w_patch": params["w_patch"].astype(jnp.bfloat16),
        "b_patch": params["b_patch"],
        "cls": params["cls"],
        "pos": params["pos"],
        "ln_f_g": params["ln_f_g"],
        "ln_f_b": params["ln_f_b"],
        "layers": {
            "ln1_g": stack("ln1_g"), "ln1_b": stack("ln1_b"),
            "wqkv": wqkv.astype(jnp.bfloat16), "bqkv": bqkv,
            "wproj": stack("wproj").astype(jnp.bfloat16), "bproj": stack("bproj"),
            "ln2_g": stack("ln2_g"), "ln2_b": stack("ln2_b"),
            "w1": stack("w1").astype(jnp.bfloat16), "b1": stack("b1"),
            "w2": stack("w2").astype(jnp.bfloat16), "b2": stack("b2"),
        },
    }


def vit_forward(x_nchw, kparams, *, patch_size, num_heads):
    patches = extract_patches(x_nchw, patch_size).astype(jnp.bfloat16)
    B, P, _ = patches.shape
    n_real = P + 1
    n_pad = _round_up(n_real, 8)            # sublane-aligned token count

    tok = run_patch_embed(patches, kparams["w_patch"], kparams["b_patch"],
                          kparams["cls"], kparams["pos"], n_pad)
    tok = run_vit_layers(tok, kparams["layers"], kparams["ln_f_g"],
                         kparams["ln_f_b"], num_heads=num_heads, n_real=n_real)
    return tok[:, :n_real, :]


# pure-JAX reference (same math / same bf16-matmul policy) for correctness
def _mm(a, w):
    return jnp.dot(a.astype(jnp.bfloat16), w.astype(jnp.bfloat16),
                   preferred_element_type=jnp.float32)


def vit_forward_ref(x_nchw, params, *, patch_size, num_heads):
    patches = extract_patches(x_nchw, patch_size)
    B = patches.shape[0]
    D = params["w_patch"].shape[1]
    hd = D // num_heads

    tok = _mm(patches, params["w_patch"]) + params["b_patch"]
    cls = jnp.broadcast_to(params["cls"], (B, 1, D))
    x = jnp.concatenate([cls, tok], axis=1) + params["pos"]

    def ln(z, g, b):
        mu = z.mean(-1, keepdims=True)
        var = ((z - mu) ** 2).mean(-1, keepdims=True)
        return (z - mu) / jnp.sqrt(var + LN_EPS) * g + b

    for blk in params["blocks"]:
        h = ln(x, blk["ln1_g"], blk["ln1_b"])
        qkv = _mm(h, blk["wqkv"]) + blk["bqkv"]
        Bn, N, _ = qkv.shape
        q, k, v = (qkv[..., i * D:(i + 1) * D].reshape(Bn, N, num_heads, hd).transpose(0, 2, 1, 3)
                   for i in range(3))
        q = q * hd ** -0.5
        s = jnp.einsum("bhqd,bhkd->bhqk", q.astype(jnp.bfloat16), k.astype(jnp.bfloat16),
                       preferred_element_type=jnp.float32)
        a = jax.nn.softmax(s, axis=-1)
        ctx = jnp.einsum("bhqk,bhkd->bhqd", a.astype(jnp.bfloat16), v.astype(jnp.bfloat16),
                         preferred_element_type=jnp.float32)
        ctx = ctx.transpose(0, 2, 1, 3).reshape(Bn, N, D)
        x = x + _mm(ctx, blk["wproj"]) + blk["bproj"]
        h2 = ln(x, blk["ln2_g"], blk["ln2_b"])
        m = _mm(h2, blk["w1"]) + blk["b1"]
        m = _gelu_exact(m)
        x = x + _mm(m, blk["w2"]) + blk["b2"]
    return ln(x, params["ln_f_g"], params["ln_f_b"])


if __name__ == "__main__":
    B, C, H, W = 2, 3, 16, 16
    patch_size, embed_dim, depth, num_heads, mlp_ratio = 4, 32, 2, 4, 4.0

    key = jax.random.PRNGKey(0)
    kx, kp = jax.random.split(key)
    x = jax.random.normal(kx, (B, C, H, W), jnp.float32)
    params = init_params(kp, in_channels=C, patch_size=patch_size, img_size=H,
                         embed_dim=embed_dim, depth=depth, num_heads=num_heads,
                         mlp_ratio=mlp_ratio)
    kparams = prepare_params(params, num_heads=num_heads)

    fwd = jax.jit(functools.partial(vit_forward, patch_size=patch_size, num_heads=num_heads))
    out = jax.block_until_ready(fwd(x, kparams))

    N = (H // patch_size) * (W // patch_size) + 1
    assert out.shape == (B, N, embed_dim), out.shape
    assert bool(jnp.all(jnp.isfinite(out))), "non-finite output"

    ref = vit_forward_ref(x, params, patch_size=patch_size, num_heads=num_heads)
    max_diff = float(jnp.max(jnp.abs(out - ref)))
    assert jnp.allclose(out, ref, atol=3e-2, rtol=3e-2), f"mismatch vs reference, max|diff|={max_diff}"

    print("KERNEL_OK")
</pallas_src>

<mosaic_0001>
module attributes {stable_mosaic.version = 11 : i64} {
  func.func @patch_embed_kernel(%arg0: i32, %arg1: memref<1x16x48xbf16, #tpu.memory_space<vmem>>, %arg2: memref<48x32xbf16, #tpu.memory_space<vmem>>, %arg3: memref<1x32xf32, #tpu.memory_space<vmem>>, %arg4: memref<1x1x32xf32, #tpu.memory_space<vmem>>, %arg5: memref<1x17x32xf32, #tpu.memory_space<vmem>>, %arg6: memref<1x24x32xf32, #tpu.memory_space<vmem>>) attributes {dimension_semantics = [#tpu.dimension_semantics<parallel>], iteration_bounds = array<i64: 2>, scalar_prefetch = 0 : i64, scratch_operands = 0 : i64, tpu.core_type = #tpu.core_type<tc>, window_params = [{transform_indices = @transform_0, window_bounds = array<i64: 1, 16, 48>}, {pipeline_mode = #tpu.pipeline_mode<synchronous>, transform_indices = @transform_1, window_bounds = array<i64: 48, 32>}, {pipeline_mode = #tpu.pipeline_mode<synchronous>, transform_indices = @transform_2, window_bounds = array<i64: 1, 32>}, {pipeline_mode = #tpu.pipeline_mode<synchronous>, transform_indices = @transform_3, window_bounds = array<i64: 1, 1, 32>}, {pipeline_mode = #tpu.pipeline_mode<synchronous>, transform_indices = @transform_4, window_bounds = array<i64: 1, 17, 32>}, {transform_indices = @transform_5, window_bounds = array<i64: 1, 24, 32>}]} {
    %c0 = arith.constant 0 : index
    %c0_0 = arith.constant 0 : index
    %c0_1 = arith.constant 0 : index
    %0 = vector.load %arg1[%c0, %c0_0, %c0_1] : memref<1x16x48xbf16, #tpu.memory_space<vmem>>, vector<1x16x48xbf16>
    %1 = vector.shape_cast %0 : vector<1x16x48xbf16> to vector<16x48xbf16>
    %c0_2 = arith.constant 0 : index
    %c0_3 = arith.constant 0 : index
    %2 = vector.load %arg2[%c0_2, %c0_3] : memref<48x32xbf16, #tpu.memory_space<vmem>>, vector<48x32xbf16>
    %cst = arith.constant dense<0.000000e+00> : vector<16x32xf32>
    %3 = tpu.matmul %1, %2, %cst {dimension_numbers = #tpu.dot_dimension_numbers<[1], [0], [0], [1], [0, 0, 1, 1], [], []>} : vector<16x48xbf16>, vector<48x32xbf16>, vector<16x32xf32> -> vector<16x32xf32>
    %c0_4 = arith.constant 0 : index
    %c0_5 = arith.constant 0 : index
    %4 = vector.load %arg3[%c0_4, %c0_5] : memref<1x32xf32, #tpu.memory_space<vmem>>, vector<1x32xf32>
    %5 = vector.broadcast %4 : vector<1x32xf32> to vector<16x32xf32>
    %6 = arith.addf %3, %5 : vector<16x32xf32>
    %c0_6 = arith.constant 0 : index
    %c0_7 = arith.constant 0 : index
    %c0_8 = arith.constant 0 : index
    %7 = vector.load %arg4[%c0_6, %c0_7, %c0_8] : memref<1x1x32xf32, #tpu.memory_space<vmem>>, vector<1x1x32xf32>
    %8 = vector.shape_cast %7 : vector<1x1x32xf32> to vector<1x32xf32>
    %9 = tpu.concatenate %8, %6 in 0 : vector<1x32xf32>, vector<16x32xf32> -> vector<17x32xf32>
    %c0_9 = arith.constant 0 : index
    %c0_10 = arith.constant 0 : index
    %c0_11 = arith.constant 0 : index
    %10 = vector.load %arg5[%c0_9, %c0_10, %c0_11] : memref<1x17x32xf32, #tpu.memory_space<vmem>>, vector<1x17x32xf32>
    %11 = vector.shape_cast %10 : vector<1x17x32xf32> to vector<17x32xf32>
    %12 = arith.addf %9, %11 : vector<17x32xf32>
    %cst_12 = arith.constant 0.000000e+00 : f32
    %13 = vector.broadcast %cst_12 : f32 to vector<7x32xf32>
    %14 = tpu.concatenate %12, %13 in 0 : vector<17x32xf32>, vector<7x32xf32> -> vector<24x32xf32>
    %c0_13 = arith.constant 0 : index
    %c0_14 = arith.constant 0 : index
    %c0_15 = arith.constant 0 : index
    %15 = vector.load %arg6[%c0_13, %c0_14, %c0_15] : memref<1x24x32xf32, #tpu.memory_space<vmem>>, vector<1x24x32xf32>
    %16 = vector.shape_cast %15 : vector<1x24x32xf32> to vector<24x32xf32>
    %17 = vector.shape_cast %14 : vector<24x32xf32> to vector<1x24x32xf32>
    tpu.vector_store %arg6[%c0_13, %c0_14, %c0_15], %17 {strides = array<i32>} : memref<1x24x32xf32, #tpu.memory_space<vmem>>, vector<1x24x32xf32>,
    return
  }
  func.func @transform_0(%arg0: i32) -> (i32, i32, i32) {
    %c0_i32 = arith.constant 0 : i32
    %c0_i32_0 = arith.constant 0 : i32
    %c0_i32_1 = arith.constant 0 : i32
    return %arg0, %c0_i32, %c0_i32_0 : i32, i32, i32
  }
  func.func @transform_1(%arg0: i32) -> (i32, i32) {
    %c0_i32 = arith.constant 0 : i32
    %c0_i32_0 = arith.constant 0 : i32
    %c0_i32_1 = arith.constant 0 : i32
    return %c0_i32, %c0_i32_0 : i32, i32
  }
  func.func @transform_2(%arg0: i32) -> (i32, i32) {
    %c0_i32 = arith.constant 0 : i32
    %c0_i32_0 = arith.constant 0 : i32
    %c0_i32_1 = arith.constant 0 : i32
    return %c0_i32, %c0_i32_0 : i32, i32
  }
  func.func @transform_3(%arg0: i32) -> (i32, i32, i32) {
    %c0_i32 = arith.constant 0 : i32
    %c0_i32_0 = arith.constant 0 : i32
    %c0_i32_1 = arith.constant 0 : i32
    %c0_i32_2 = arith.constant 0 : i32
    return %c0_i32, %c0_i32_0, %c0_i32_1 : i32, i32, i32
  }
  func.func @transform_4(%arg0: i32) -> (i32, i32, i32) {
    %c0_i32 = arith.constant 0 : i32
    %c0_i32_0 = arith.constant 0 : i32
    %c0_i32_1 = arith.constant 0 : i32
    %c0_i32_2 = arith.constant 0 : i32
    return %c0_i32, %c0_i32_0, %c0_i32_1 : i32, i32, i32
  }
  func.func @transform_5(%arg0: i32) -> (i32, i32, i32) {
    %c0_i32 = arith.constant 0 : i32
    %c0_i32_0 = arith.constant 0 : i32
    %c0_i32_1 = arith.constant 0 : i32
    return %arg0, %c0_i32, %c0_i32_0 : i32, i32, i32
  }
}

module attributes {stable_mosaic.version = 11 : i64} {
  func.func @vit_layer_kernel(%arg0: i32, %arg1: i32, %arg2: memref<1x24x32xf32, #tpu.memory_space<vmem>>, %arg3: memref<1x1x32xf32, #tpu.memory_space<vmem>>, %arg4: memref<1x1x32xf32, #tpu.memory_space<vmem>>, %arg5: memref<1x32x96xbf16, #tpu.memory_space<vmem>>, %arg6: memref<1x1x96xf32, #tpu.memory_space<vmem>>, %arg7: memref<1x32x32xbf16, #tpu.memory_space<vmem>>, %arg8: memref<1x1x32xf32, #tpu.memory_space<vmem>>, %arg9: memref<1x1x32xf32, #tpu.memory_space<vmem>>, %arg10: memref<1x1x32xf32, #tpu.memory_space<vmem>>, %arg11: memref<1x32x128xbf16, #tpu.memory_space<vmem>>, %arg12: memref<1x1x128xf32, #tpu.memory_space<vmem>>, %arg13: memref<1x128x32xbf16, #tpu.memory_space<vmem>>, %arg14: memref<1x1x32xf32, #tpu.memory_space<vmem>>, %arg15: memref<1x32xf32, #tpu.memory_space<vmem>>, %arg16: memref<1x32xf32, #tpu.memory_space<vmem>>, %arg17: memref<1x24x32xf32, #tpu.memory_space<vmem>>) attributes {dimension_semantics = [#tpu.dimension_semantics<parallel>, #tpu.dimension_semantics<arbitrary>], iteration_bounds = array<i64: 2, 2>, scalar_prefetch = 0 : i64, scratch_operands = 0 : i64, tpu.core_type = #tpu.core_type<tc>, window_params = [{transform_indices = @transform_0, window_bounds = array<i64: 1, 24, 32>}, {transform_indices = @transform_1, window_bounds = array<i64: 1, 1, 32>}, {transform_indices = @transform_2, window_bounds = array<i64: 1, 1, 32>}, {transform_indices = @transform_3, window_bounds = array<i64: 1, 32, 96>}, {transform_indices = @transform_4, window_bounds = array<i64: 1, 1, 96>}, {transform_indices = @transform_5, window_bounds = array<i64: 1, 32, 32>}, {transform_indices = @transform_6, window_bounds = array<i64: 1, 1, 32>}, {transform_indices = @transform_7, window_bounds = array<i64: 1, 1, 32>}, {transform_indices = @transform_8, window_bounds = array<i64: 1, 1, 32>}, {transform_indices = @transform_9, window_bounds = array<i64: 1, 32, 128>}, {transform_indices = @transform_10, window_bounds = array<i64: 1, 1, 128>}, {transform_indices = @transform_11, window_bounds = array<i64: 1, 128, 32>}, {transform_indices = @transform_12, window_bounds = array<i64: 1, 1, 32>}, {pipeline_mode = #tpu.pipeline_mode<synchronous>, transform_indices = @transform_13, window_bounds = array<i64: 1, 32>}, {pipeline_mode = #tpu.pipeline_mode<synchronous>, transform_indices = @transform_14, window_bounds = array<i64: 1, 32>}, {transform_indices = @transform_15, window_bounds = array<i64: 1, 24, 32>}]} {
    %c0_i32 = arith.constant 0 : i32
    %0 = arith.cmpi eq, %arg1, %c0_i32 : i32
    %1 = arith.extui %0 : i1 to i32
    %c0_i32_0 = arith.constant 0 : i32
    %2 = arith.cmpi ne, %1, %c0_i32_0 : i32
    scf.if %2 {
      %c0_79 = arith.constant 0 : index
      %c0_80 = arith.constant 0 : index
      %c0_81 = arith.constant 0 : index
      %196 = vector.load %arg2[%c0_79, %c0_80, %c0_81] : memref<1x24x32xf32, #tpu.memory_space<vmem>>, vector<1x24x32xf32>
      %c0_82 = arith.constant 0 : index
      %c0_83 = arith.constant 0 : index
      %c0_84 = arith.constant 0 : index
      %197 = vector.load %arg17[%c0_82, %c0_83, %c0_84] : memref<1x24x32xf32, #tpu.memory_space<vmem>>, vector<1x24x32xf32>
      tpu.vector_store %arg17[%c0_82, %c0_83, %c0_84], %196 {strides = array<i32>} : memref<1x24x32xf32, #tpu.memory_space<vmem>>, vector<1x24x32xf32>,
    } else {
    }
    %c0 = arith.constant 0 : index
    %c0_1 = arith.constant 0 : index
    %c0_2 = arith.constant 0 : index
    %3 = vector.load %arg17[%c0, %c0_1, %c0_2] : memref<1x24x32xf32, #tpu.memory_space<vmem>>, vector<1x24x32xf32>
    %4 = vector.shape_cast %3 : vector<1x24x32xf32> to vector<24x32xf32>
    %c0_3 = arith.constant 0 : index
    %c0_4 = arith.constant 0 : index
    %c0_5 = arith.constant 0 : index
    %5 = vector.load %arg3[%c0_3, %c0_4, %c0_5] : memref<1x1x32xf32, #tpu.memory_space<vmem>>, vector<1x1x32xf32>
    %6 = vector.shape_cast %5 : vector<1x1x32xf32> to vector<1x32xf32>
    %c0_6 = arith.constant 0 : index
    %c0_7 = arith.constant 0 : index
    %c0_8 = arith.constant 0 : index
    %7 = vector.load %arg4[%c0_6, %c0_7, %c0_8] : memref<1x1x32xf32, #tpu.memory_space<vmem>>, vector<1x1x32xf32>
    %8 = vector.shape_cast %7 : vector<1x1x32xf32> to vector<1x32xf32>
    %cst = arith.constant dense<0.000000e+00> : vector<24xf32>
    %9 = vector.multi_reduction <add>, %4, %cst [1] : vector<24x32xf32> to vector<24xf32>
    %10 = vector.shape_cast %9 : vector<24xf32> to vector<24x1xf32>
    %cst_9 = arith.constant 3.200000e+01 : f32
    %11 = vector.broadcast %cst_9 : f32 to vector<24x1xf32>
    %12 = arith.divf %10, %11 : vector<24x1xf32>
    %13 = vector.broadcast %12 : vector<24x1xf32> to vector<24x32xf32>
    %14 = arith.subf %4, %13 : vector<24x32xf32>
    %15 = arith.mulf %14, %14 : vector<24x32xf32>
    %cst_10 = arith.constant dense<0.000000e+00> : vector<24xf32>
    %16 = vector.multi_reduction <add>, %15, %cst_10 [1] : vector<24x32xf32> to vector<24xf32>
    %17 = vector.shape_cast %16 : vector<24xf32> to vector<24x1xf32>
    %cst_11 = arith.constant 3.200000e+01 : f32
    %18 = vector.broadcast %cst_11 : f32 to vector<24x1xf32>
    %19 = arith.divf %17, %18 : vector<24x1xf32>
    %20 = vector.broadcast %12 : vector<24x1xf32> to vector<24x32xf32>
    %21 = arith.subf %4, %20 : vector<24x32xf32>
    %cst_12 = arith.constant 9.99999974E-6 : f32
    %22 = vector.broadcast %cst_12 : f32 to vector<24x1xf32>
    %23 = arith.addf %19, %22 : vector<24x1xf32>
    %24 = math.rsqrt %23 : vector<24x1xf32>
    %25 = vector.broadcast %24 : vector<24x1xf32> to vector<24x32xf32>
    %26 = arith.mulf %21, %25 : vector<24x32xf32>
    %27 = vector.broadcast %6 : vector<1x32xf32> to vector<24x32xf32>
    %28 = arith.mulf %26, %27 : vector<24x32xf32>
    %29 = vector.broadcast %8 : vector<1x32xf32> to vector<24x32xf32>
    %30 = arith.addf %28, %29 : vector<24x32xf32>
    %31 = arith.truncf %30 : vector<24x32xf32> to vector<24x32xbf16>
    %c0_13 = arith.constant 0 : index
    %c0_14 = arith.constant 0 : index
    %c0_15 = arith.constant 0 : index
    %32 = vector.load %arg5[%c0_13, %c0_14, %c0_15] : memref<1x32x96xbf16, #tpu.memory_space<vmem>>, vector<1x32x96xbf16>
    %33 = vector.shape_cast %32 : vector<1x32x96xbf16> to vector<32x96xbf16>
    %cst_16 = arith.constant dense<0.000000e+00> : vector<24x96xf32>
    %34 = tpu.matmul %31, %33, %cst_16 {dimension_numbers = #tpu.dot_dimension_numbers<[1], [0], [0], [1], [0, 0, 1, 1], [], []>} : vector<24x32xbf16>, vector<32x96xbf16>, vector<24x96xf32> -> vector<24x96xf32>
    %c0_17 = arith.constant 0 : index
    %c0_18 = arith.constant 0 : index
    %c0_19 = arith.constant 0 : index
    %35 = vector.load %arg6[%c0_17, %c0_18, %c0_19] : memref<1x1x96xf32, #tpu.memory_space<vmem>>, vector<1x1x96xf32>
    %36 = vector.shape_cast %35 : vector<1x1x96xf32> to vector<1x96xf32>
    %37 = vector.broadcast %36 : vector<1x96xf32> to vector<24x96xf32>
    %38 = arith.addf %34, %37 : vector<24x96xf32>
    %39 = tpu.iota {dimensions = array<i32: 1>} : vector<24x24xi32>
    %c17_i32 = arith.constant 17 : i32
    %40 = vector.broadcast %c17_i32 : i32 to vector<24x24xi32>
    %41 = arith.cmpi slt, %39, %40 : vector<24x24xi32>
    %42 = vector.extract_strided_slice %38 {offsets = [0, 0], sizes = [24, 8], strides = [1, 1]} : vector<24x96xf32> to vector<24x8xf32>
    %43 = arith.truncf %42 : vector<24x8xf32> to vector<24x8xbf16>
    %44 = vector.extract_strided_slice %38 {offsets = [0, 32], sizes = [24, 8], strides = [1, 1]} : vector<24x96xf32> to vector<24x8xf32>
    %45 = arith.truncf %44 : vector<24x8xf32> to vector<24x8xbf16>
    %46 = vector.extract_strided_slice %38 {offsets = [0, 64], sizes = [24, 8], strides = [1, 1]} : vector<24x96xf32> to vector<24x8xf32>
    %47 = arith.truncf %46 : vector<24x8xf32> to vector<24x8xbf16>
    %cst_20 = arith.constant dense<0.000000e+00> : vector<24x24xf32>
    %48 = tpu.matmul %43, %45, %cst_20 {dimension_numbers = #tpu.dot_dimension_numbers<[1], [1], [0], [0], [0, 0, 1, 0], [], []>} : vector<24x8xbf16>, vector<24x8xbf16>, vector<24x24xf32> -> vector<24x24xf32>
    %cst_21 = arith.constant -1.000000e+30 : f32
    %49 = vector.broadcast %cst_21 : f32 to vector<24x24xf32>
    %50 = arith.select %41, %48, %49 : vector<24x24xi1>, vector<24x24xf32>
    %cst_22 = arith.constant dense<0xFF800000> : vector<24xf32>
    %51 = vector.multi_reduction <maximumf>, %50, %cst_22 [1] : vector<24x24xf32> to vector<24xf32>
    %52 = vector.shape_cast %51 : vector<24xf32> to vector<24x1xf32>
    %53 = vector.broadcast %52 : vector<24x1xf32> to vector<24x24xf32>
    %54 = arith.subf %50, %53 : vector<24x24xf32>
    %55 = math.exp %54 : vector<24x24xf32>
    %cst_23 = arith.constant dense<0.000000e+00> : vector<24xf32>
    %56 = vector.multi_reduction <add>, %55, %cst_23 [1] : vector<24x24xf32> to vector<24xf32>
    %57 = vector.shape_cast %56 : vector<24xf32> to vector<24x1xf32>
    %58 = arith.truncf %55 : vector<24x24xf32> to vector<24x24xbf16>
    %cst_24 = arith.constant dense<0.000000e+00> : vector<24x8xf32>
    %59 = tpu.matmul %58, %47, %cst_24 {dimension_numbers = #tpu.dot_dimension_numbers<[1], [0], [0], [1], [0, 0, 1, 1], [], []>} : vector<24x24xbf16>, vector<24x8xbf16>, vector<24x8xf32> -> vector<24x8xf32>
    %60 = tpu.reciprocal %57 {approx = true} : vector<24x1xf32> -> vector<24x1xf32>
    %61 = vector.broadcast %60 : vector<24x1xf32> to vector<24x8xf32>
    %62 = arith.mulf %59, %61 : vector<24x8xf32>
    %63 = arith.truncf %62 : vector<24x8xf32> to vector<24x8xbf16>
    %64 = vector.extract_strided_slice %38 {offsets = [0, 8], sizes = [24, 8], strides = [1, 1]} : vector<24x96xf32> to vector<24x8xf32>
    %65 = arith.truncf %64 : vector<24x8xf32> to vector<24x8xbf16>
    %66 = vector.extract_strided_slice %38 {offsets = [0, 40], sizes = [24, 8], strides = [1, 1]} : vector<24x96xf32> to vector<24x8xf32>
    %67 = arith.truncf %66 : vector<24x8xf32> to vector<24x8xbf16>
    %68 = vector.extract_strided_slice %38 {offsets = [0, 72], sizes = [24, 8], strides = [1, 1]} : vector<24x96xf32> to vector<24x8xf32>
    %69 = arith.truncf %68 : vector<24x8xf32> to vector<24x8xbf16>
    %cst_25 = arith.constant dense<0.000000e+00> : vector<24x24xf32>
    %70 = tpu.matmul %65, %67, %cst_25 {dimension_numbers = #tpu.dot_dimension_numbers<[1], [1], [0], [0], [0, 0, 1, 0], [], []>} : vector<24x8xbf16>, vector<24x8xbf16>, vector<24x24xf32> -> vector<24x24xf32>
    %cst_26 = arith.constant -1.000000e+30 : f32
    %71 = vector.broadcast %cst_26 : f32 to vector<24x24xf32>
    %72 = arith.select %41, %70, %71 : vector<24x24xi1>, vector<24x24xf32>
    %cst_27 = arith.constant dense<0xFF800000> : vector<24xf32>
    %73 = vector.multi_reduction <maximumf>, %72, %cst_27 [1] : vector<24x24xf32> to vector<24xf32>
    %74 = vector.shape_cast %73 : vector<24xf32> to vector<24x1xf32>
    %75 = vector.broadcast %74 : vector<24x1xf32> to vector<24x24xf32>
    %76 = arith.subf %72, %75 : vector<24x24xf32>
    %77 = math.exp %76 : vector<24x24xf32>
    %cst_28 = arith.constant dense<0.000000e+00> : vector<24xf32>
    %78 = vector.multi_reduction <add>, %77, %cst_28 [1] : vector<24x24xf32> to vector<24xf32>
    %79 = vector.shape_cast %78 : vector<24xf32> to vector<24x1xf32>
    %80 = arith.truncf %77 : vector<24x24xf32> to vector<24x24xbf16>
    %cst_29 = arith.constant dense<0.000000e+00> : vector<24x8xf32>
    %81 = tpu.matmul %80, %69, %cst_29 {dimension_numbers = #tpu.dot_dimension_numbers<[1], [0], [0], [1], [0, 0, 1, 1], [], []>} : vector<24x24xbf16>, vector<24x8xbf16>, vector<24x8xf32> -> vector<24x8xf32>
    %82 = tpu.reciprocal %79 {approx = true} : vector<24x1xf32> -> vector<24x1xf32>
    %83 = vector.broadcast %82 : vector<24x1xf32> to vector<24x8xf32>
    %84 = arith.mulf %81, %83 : vector<24x8xf32>
    %85 = arith.truncf %84 : vector<24x8xf32> to vector<24x8xbf16>
    %86 = vector.extract_strided_slice %38 {offsets = [0, 16], sizes = [24, 8], strides = [1, 1]} : vector<24x96xf32> to vector<24x8xf32>
    %87 = arith.truncf %86 : vector<24x8xf32> to vector<24x8xbf16>
    %88 = vector.extract_strided_slice %38 {offsets = [0, 48], sizes = [24, 8], strides = [1, 1]} : vector<24x96xf32> to vector<24x8xf32>
    %89 = arith.truncf %88 : vector<24x8xf32> to vector<24x8xbf16>
    %90 = vector.extract_strided_slice %38 {offsets = [0, 80], sizes = [24, 8], strides = [1, 1]} : vector<24x96xf32> to vector<24x8xf32>
    %91 = arith.truncf %90 : vector<24x8xf32> to vector<24x8xbf16>
    %cst_30 = arith.constant dense<0.000000e+00> : vector<24x24xf32>
    %92 = tpu.matmul %87, %89, %cst_30 {dimension_numbers = #tpu.dot_dimension_numbers<[1], [1], [0], [0], [0, 0, 1, 0], [], []>} : vector<24x8xbf16>, vector<24x8xbf16>, vector<24x24xf32> -> vector<24x24xf32>
    %cst_31 = arith.constant -1.000000e+30 : f32
    %93 = vector.broadcast %cst_31 : f32 to vector<24x24xf32>
    %94 = arith.select %41, %92, %93 : vector<24x24xi1>, vector<24x24xf32>
    %cst_32 = arith.constant dense<0xFF800000> : vector<24xf32>
    %95 = vector.multi_reduction <maximumf>, %94, %cst_32 [1] : vector<24x24xf32> to vector<24xf32>
    %96 = vector.shape_cast %95 : vector<24xf32> to vector<24x1xf32>
    %97 = vector.broadcast %96 : vector<24x1xf32> to vector<24x24xf32>
    %98 = arith.subf %94, %97 : vector<24x24xf32>
    %99 = math.exp %98 : vector<24x24xf32>
    %cst_33 = arith.constant dense<0.000000e+00> : vector<24xf32>
    %100 = vector.multi_reduction <add>, %99, %cst_33 [1] : vector<24x24xf32> to vector<24xf32>
    %101 = vector.shape_cast %100 : vector<24xf32> to vector<24x1xf32>
    %102 = arith.truncf %99 : vector<24x24xf32> to vector<24x24xbf16>
    %cst_34 = arith.constant dense<0.000000e+00> : vector<24x8xf32>
    %103 = tpu.matmul %102, %91, %cst_34 {dimension_numbers = #tpu.dot_dimension_numbers<[1], [0], [0], [1], [0, 0, 1, 1], [], []>} : vector<24x24xbf16>, vector<24x8xbf16>, vector<24x8xf32> -> vector<24x8xf32>
    %104 = tpu.reciprocal %101 {approx = true} : vector<24x1xf32> -> vector<24x1xf32>
    %105 = vector.broadcast %104 : vector<24x1xf32> to vector<24x8xf32>
    %106 = arith.mulf %103, %105 : vector<24x8xf32>
    %107 = arith.truncf %106 : vector<24x8xf32> to vector<24x8xbf16>
    %108 = vector.extract_strided_slice %38 {offsets = [0, 24], sizes = [24, 8], strides = [1, 1]} : vector<24x96xf32> to vector<24x8xf32>
    %109 = arith.truncf %108 : vector<24x8xf32> to vector<24x8xbf16>
    %110 = vector.extract_strided_slice %38 {offsets = [0, 56], sizes = [24, 8], strides = [1, 1]} : vector<24x96xf32> to vector<24x8xf32>
    %111 = arith.truncf %110 : vector<24x8xf32> to vector<24x8xbf16>
    %112 = vector.extract_strided_slice %38 {offsets = [0, 88], sizes = [24, 8], strides = [1, 1]} : vector<24x96xf32> to vector<24x8xf32>
    %113 = arith.truncf %112 : vector<24x8xf32> to vector<24x8xbf16>
    %cst_35 = arith.constant dense<0.000000e+00> : vector<24x24xf32>
    %114 = tpu.matmul %109, %111, %cst_35 {dimension_numbers = #tpu.dot_dimension_numbers<[1], [1], [0], [0], [0, 0, 1, 0], [], []>} : vector<24x8xbf16>, vector<24x8xbf16>, vector<24x24xf32> -> vector<24x24xf32>
    %cst_36 = arith.constant -1.000000e+30 : f32
    %115 = vector.broadcast %cst_36 : f32 to vector<24x24xf32>
    %116 = arith.select %41, %114, %115 : vector<24x24xi1>, vector<24x24xf32>
    %cst_37 = arith.constant dense<0xFF800000> : vector<24xf32>
    %117 = vector.multi_reduction <maximumf>, %116, %cst_37 [1] : vector<24x24xf32> to vector<24xf32>
    %118 = vector.shape_cast %117 : vector<24xf32> to vector<24x1xf32>
    %119 = vector.broadcast %118 : vector<24x1xf32> to vector<24x24xf32>
    %120 = arith.subf %116, %119 : vector<24x24xf32>
    %121 = math.exp %120 : vector<24x24xf32>
    %cst_38 = arith.constant dense<0.000000e+00> : vector<24xf32>
    %122 = vector.multi_reduction <add>, %121, %cst_38 [1] : vector<24x24xf32> to vector<24xf32>
    %123 = vector.shape_cast %122 : vector<24xf32> to vector<24x1xf32>
    %124 = arith.truncf %121 : vector<24x24xf32> to vector<24x24xbf16>
    %cst_39 = arith.constant dense<0.000000e+00> : vector<24x8xf32>
    %125 = tpu.matmul %124, %113, %cst_39 {dimension_numbers = #tpu.dot_dimension_numbers<[1], [0], [0], [1], [0, 0, 1, 1], [], []>} : vector<24x24xbf16>, vector<24x8xbf16>, vector<24x8xf32> -> vector<24x8xf32>
    %126 = tpu.reciprocal %123 {approx = true} : vector<24x1xf32> -> vector<24x1xf32>
    %127 = vector.broadcast %126 : vector<24x1xf32> to vector<24x8xf32>
    %128 = arith.mulf %125, %127 : vector<24x8xf32>
    %129 = arith.truncf %128 : vector<24x8xf32> to vector<24x8xbf16>
    %130 = tpu.concatenate %63, %85, %107, %129 in 1 : vector<24x8xbf16>, vector<24x8xbf16>, vector<24x8xbf16>, vector<24x8xbf16> -> vector<24x32xbf16>
    %c0_40 = arith.constant 0 : index
    %c0_41 = arith.constant 0 : index
    %c0_42 = arith.constant 0 : index
    %131 = vector.load %arg7[%c0_40, %c0_41, %c0_42] : memref<1x32x32xbf16, #tpu.memory_space<vmem>>, vector<1x32x32xbf16>
    %132 = vector.shape_cast %131 : vector<1x32x32xbf16> to vector<32x32xbf16>
    %cst_43 = arith.constant dense<0.000000e+00> : vector<24x32xf32>
    %133 = tpu.matmul %130, %132, %cst_43 {dimension_numbers = #tpu.dot_dimension_numbers<[1], [0], [0], [1], [0, 0, 1, 1], [], []>} : vector<24x32xbf16>, vector<32x32xbf16>, vector<24x32xf32> -> vector<24x32xf32>
    %c0_44 = arith.constant 0 : index
    %c0_45 = arith.constant 0 : index
    %c0_46 = arith.constant 0 : index
    %134 = vector.load %arg8[%c0_44, %c0_45, %c0_46] : memref<1x1x32xf32, #tpu.memory_space<vmem>>, vector<1x1x32xf32>
    %135 = vector.shape_cast %134 : vector<1x1x32xf32> to vector<1x32xf32>
    %136 = vector.broadcast %135 : vector<1x32xf32> to vector<24x32xf32>
    %137 = arith.addf %133, %136 : vector<24x32xf32>
    %138 = arith.addf %4, %137 : vector<24x32xf32>
    %c0_47 = arith.constant 0 : index
    %c0_48 = arith.constant 0 : index
    %c0_49 = arith.constant 0 : index
    %139 = vector.load %arg9[%c0_47, %c0_48, %c0_49] : memref<1x1x32xf32, #tpu.memory_space<vmem>>, vector<1x1x32xf32>
    %140 = vector.shape_cast %139 : vector<1x1x32xf32> to vector<1x32xf32>
    %c0_50 = arith.constant 0 : index
    %c0_51 = arith.constant 0 : index
    %c0_52 = arith.constant 0 : index
    %141 = vector.load %arg10[%c0_50, %c0_51, %c0_52] : memref<1x1x32xf32, #tpu.memory_space<vmem>>, vector<1x1x32xf32>
    %142 = vector.shape_cast %141 : vector<1x1x32xf32> to vector<1x32xf32>
    %cst_53 = arith.constant dense<0.000000e+00> : vector<24xf32>
    %143 = vector.multi_reduction <add>, %138, %cst_53 [1] : vector<24x32xf32> to vector<24xf32>
    %144 = vector.shape_cast %143 : vector<24xf32> to vector<24x1xf32>
    %cst_54 = arith.constant 3.200000e+01 : f32
    %145 = vector.broadcast %cst_54 : f32 to vector<24x1xf32>
    %146 = arith.divf %144, %145 : vector<24x1xf32>
    %147 = vector.broadcast %146 : vector<24x1xf32> to vector<24x32xf32>
    %148 = arith.subf %138, %147 : vector<24x32xf32>
    %149 = arith.mulf %148, %148 : vector<24x32xf32>
    %cst_55 = arith.constant dense<0.000000e+00> : vector<24xf32>
    %150 = vector.multi_reduction <add>, %149, %cst_55 [1] : vector<24x32xf32> to vector<24xf32>
    %151 = vector.shape_cast %150 : vector<24xf32> to vector<24x1xf32>
    %cst_56 = arith.constant 3.200000e+01 : f32
    %152 = vector.broadcast %cst_56 : f32 to vector<24x1xf32>
    %153 = arith.divf %151, %152 : vector<24x1xf32>
    %154 = vector.broadcast %146 : vector<24x1xf32> to vector<24x32xf32>
    %155 = arith.subf %138, %154 : vector<24x32xf32>
    %cst_57 = arith.constant 9.99999974E-6 : f32
    %156 = vector.broadcast %cst_57 : f32 to vector<24x1xf32>
    %157 = arith.addf %153, %156 : vector<24x1xf32>
    %158 = math.rsqrt %157 : vector<24x1xf32>
    %159 = vector.broadcast %158 : vector<24x1xf32> to vector<24x32xf32>
    %160 = arith.mulf %155, %159 : vector<24x32xf32>
    %161 = vector.broadcast %140 : vector<1x32xf32> to vector<24x32xf32>
    %162 = arith.mulf %160, %161 : vector<24x32xf32>
    %163 = vector.broadcast %142 : vector<1x32xf32> to vector<24x32xf32>
    %164 = arith.addf %162, %163 : vector<24x32xf32>
    %165 = arith.truncf %164 : vector<24x32xf32> to vector<24x32xbf16>
    %c0_58 = arith.constant 0 : index
    %c0_59 = arith.constant 0 : index
    %c0_60 = arith.constant 0 : index
    %166 = vector.load %arg11[%c0_58, %c0_59, %c0_60] : memref<1x32x128xbf16, #tpu.memory_space<vmem>>, vector<1x32x128xbf16>
    %167 = vector.shape_cast %166 : vector<1x32x128xbf16> to vector<32x128xbf16>
    %cst_61 = arith.constant dense<0.000000e+00> : vector<24x128xf32>
    %168 = tpu.matmul %165, %167, %cst_61 {dimension_numbers = #tpu.dot_dimension_numbers<[1], [0], [0], [1], [0, 0, 1, 1], [], []>} : vector<24x32xbf16>, vector<32x128xbf16>, vector<24x128xf32> -> vector<24x128xf32>
    %c0_62 = arith.constant 0 : index
    %c0_63 = arith.constant 0 : index
    %c0_64 = arith.constant 0 : index
    %169 = vector.load %arg12[%c0_62, %c0_63, %c0_64] : memref<1x1x128xf32, #tpu.memory_space<vmem>>, vector<1x1x128xf32>
    %170 = vector.shape_cast %169 : vector<1x1x128xf32> to vector<1x128xf32>
    %171 = vector.broadcast %170 : vector<1x128xf32> to vector<24x128xf32>
    %172 = arith.addf %168, %171 : vector<24x128xf32>
    %cst_65 = arith.constant 5.000000e-01 : f32
    %173 = vector.broadcast %cst_65 : f32 to vector<24x128xf32>
    %174 = arith.mulf %173, %172 : vector<24x128xf32>
    %cst_66 = arith.constant 0.707106769 : f32
    %175 = vector.broadcast %cst_66 : f32 to vector<24x128xf32>
    %176 = arith.mulf %172, %175 : vector<24x128xf32>
    %177 = math.erf %176 : vector<24x128xf32>
    %cst_67 = arith.constant 1.000000e+00 : f32
    %178 = vector.broadcast %cst_67 : f32 to vector<24x128xf32>
    %179 = arith.addf %178, %177 : vector<24x128xf32>
    %180 = arith.mulf %174, %179 : vector<24x128xf32>
    %181 = arith.truncf %180 : vector<24x128xf32> to vector<24x128xbf16>
    %c0_68 = arith.constant 0 : index
    %c0_69 = arith.constant 0 : index
    %c0_70 = arith.constant 0 : index
    %182 = vector.load %arg13[%c0_68, %c0_69, %c0_70] : memref<1x128x32xbf16, #tpu.memory_space<vmem>>, vector<1x128x32xbf16>
    %183 = vector.shape_cast %182 : vector<1x128x32xbf16> to vector<128x32xbf16>
    %cst_71 = arith.constant dense<0.000000e+00> : vector<24x32xf32>
    %184 = tpu.matmul %181, %183, %cst_71 {dimension_numbers = #tpu.dot_dimension_numbers<[1], [0], [0], [1], [0, 0, 1, 1], [], []>} : vector<24x128xbf16>, vector<128x32xbf16>, vector<24x32xf32> -> vector<24x32xf32>
    %c0_72 = arith.constant 0 : index
    %c0_73 = arith.constant 0 : index
    %c0_74 = arith.constant 0 : index
    %185 = vector.load %arg14[%c0_72, %c0_73, %c0_74] : memref<1x1x32xf32, #tpu.memory_space<vmem>>, vector<1x1x32xf32>
    %186 = vector.shape_cast %185 : vector<1x1x32xf32> to vector<1x32xf32>
    %187 = vector.broadcast %186 : vector<1x32xf32> to vector<24x32xf32>
    %188 = arith.addf %184, %187 : vector<24x32xf32>
    %189 = arith.addf %138, %188 : vector<24x32xf32>
    %c0_75 = arith.constant 0 : index
    %c0_76 = arith.constant 0 : index
    %c0_77 = arith.constant 0 : index
    %190 = vector.load %arg17[%c0_75, %c0_76, %c0_77] : memref<1x24x32xf32, #tpu.memory_space<vmem>>, vector<1x24x32xf32>
    %191 = vector.shape_cast %190 : vector<1x24x32xf32> to vector<24x32xf32>
    %192 = vector.shape_cast %189 : vector<24x32xf32> to vector<1x24x32xf32>
    tpu.vector_store %arg17[%c0_75, %c0_76, %c0_77], %192 {strides = array<i32>} : memref<1x24x32xf32, #tpu.memory_space<vmem>>, vector<1x24x32xf32>,
    %c1_i32 = arith.constant 1 : i32
    %193 = arith.cmpi eq, %arg1, %c1_i32 : i32
    %194 = arith.extui %193 : i1 to i32
    %c0_i32_78 = arith.constant 0 : i32
    %195 = arith.cmpi ne, %194, %c0_i32_78 : i32
    scf.if %195 {
      %c0_79 = arith.constant 0 : index
      %c0_80 = arith.constant 0 : index
      %196 = vector.load %arg15[%c0_79, %c0_80] : memref<1x32xf32, #tpu.memory_space<vmem>>, vector<1x32xf32>
      %c0_81 = arith.constant 0 : index
      %c0_82 = arith.constant 0 : index
      %197 = vector.load %arg16[%c0_81, %c0_82] : memref<1x32xf32, #tpu.memory_space<vmem>>, vector<1x32xf32>
      %cst_83 = arith.constant dense<0.000000e+00> : vector<24xf32>
      %198 = vector.multi_reduction <add>, %189, %cst_83 [1] : vector<24x32xf32> to vector<24xf32>
      %199 = vector.shape_cast %198 : vector<24xf32> to vector<24x1xf32>
      %cst_84 = arith.constant 3.200000e+01 : f32
      %200 = vector.broadcast %cst_84 : f32 to vector<24x1xf32>
      %201 = arith.divf %199, %200 : vector<24x1xf32>
      %202 = vector.broadcast %201 : vector<24x1xf32> to vector<24x32xf32>
      %203 = arith.subf %189, %202 : vector<24x32xf32>
      %204 = arith.mulf %203, %203 : vector<24x32xf32>
      %cst_85 = arith.constant dense<0.000000e+00> : vector<24xf32>
      %205 = vector.multi_reduction <add>, %204, %cst_85 [1] : vector<24x32xf32> to vector<24xf32>
      %206 = vector.shape_cast %205 : vector<24xf32> to vector<24x1xf32>
      %cst_86 = arith.constant 3.200000e+01 : f32
      %207 = vector.broadcast %cst_86 : f32 to vector<24x1xf32>
      %208 = arith.divf %206, %207 : vector<24x1xf32>
      %209 = vector.broadcast %201 : vector<24x1xf32> to vector<24x32xf32>
      %210 = arith.subf %189, %209 : vector<24x32xf32>
      %cst_87 = arith.constant 9.99999974E-6 : f32
      %211 = vector.broadcast %cst_87 : f32 to vector<24x1xf32>
      %212 = arith.addf %208, %211 : vector<24x1xf32>
      %213 = math.rsqrt %212 : vector<24x1xf32>
      %214 = vector.broadcast %213 : vector<24x1xf32> to vector<24x32xf32>
      %215 = arith.mulf %210, %214 : vector<24x32xf32>
      %216 = vector.broadcast %196 : vector<1x32xf32> to vector<24x32xf32>
      %217 = arith.mulf %215, %216 : vector<24x32xf32>
      %218 = vector.broadcast %197 : vector<1x32xf32> to vector<24x32xf32>
      %219 = arith.addf %217, %218 : vector<24x32xf32>
      %c0_88 = arith.constant 0 : index
      %c0_89 = arith.constant 0 : index
      %c0_90 = arith.constant 0 : index
      %220 = vector.load %arg17[%c0_88, %c0_89, %c0_90] : memref<1x24x32xf32, #tpu.memory_space<vmem>>, vector<1x24x32xf32>
      %221 = vector.shape_cast %220 : vector<1x24x32xf32> to vector<24x32xf32>
      %222 = vector.shape_cast %219 : vector<24x32xf32> to vector<1x24x32xf32>
      tpu.vector_store %arg17[%c0_88, %c0_89, %c0_90], %222 {strides = array<i32>} : memref<1x24x32xf32, #tpu.memory_space<vmem>>, vector<1x24x32xf32>,
    } else {
    }
    return
  }
  func.func @transform_0(%arg0: i32, %arg1: i32) -> (i32, i32, i32) {
    %c0_i32 = arith.constant 0 : i32
    %c0_i32_0 = arith.constant 0 : i32
    %c0_i32_1 = arith.constant 0 : i32
    return %arg0, %c0_i32, %c0_i32_0 : i32, i32, i32
  }
  func.func @transform_1(%arg0: i32, %arg1: i32) -> (i32, i32, i32) {
    %c0_i32 = arith.constant 0 : i32
    %c0_i32_0 = arith.constant 0 : i32
    %c0_i32_1 = arith.constant 0 : i32
    return %arg1, %c0_i32, %c0_i32_0 : i32, i32, i32
  }
  func.func @transform_2(%arg0: i32, %arg1: i32) -> (i32, i32, i32) {
    %c0_i32 = arith.constant 0 : i32
    %c0_i32_0 = arith.constant 0 : i32
    %c0_i32_1 = arith.constant 0 : i32
    return %arg1, %c0_i32, %c0_i32_0 : i32, i32, i32
  }
  func.func @transform_3(%arg0: i32, %arg1: i32) -> (i32, i32, i32) {
    %c0_i32 = arith.constant 0 : i32
    %c0_i32_0 = arith.constant 0 : i32
    %c0_i32_1 = arith.constant 0 : i32
    return %arg1, %c0_i32, %c0_i32_0 : i32, i32, i32
  }
  func.func @transform_4(%arg0: i32, %arg1: i32) -> (i32, i32, i32) {
    %c0_i32 = arith.constant 0 : i32
    %c0_i32_0 = arith.constant 0 : i32
    %c0_i32_1 = arith.constant 0 : i32
    return %arg1, %c0_i32, %c0_i32_0 : i32, i32, i32
  }
  func.func @transform_5(%arg0: i32, %arg1: i32) -> (i32, i32, i32) {
    %c0_i32 = arith.constant 0 : i32
    %c0_i32_0 = arith.constant 0 : i32
    %c0_i32_1 = arith.constant 0 : i32
    return %arg1, %c0_i32, %c0_i32_0 : i32, i32, i32
  }
  func.func @transform_6(%arg0: i32, %arg1: i32) -> (i32, i32, i32) {
    %c0_i32 = arith.constant 0 : i32
    %c0_i32_0 = arith.constant 0 : i32
    %c0_i32_1 = arith.constant 0 : i32
    return %arg1, %c0_i32, %c0_i32_0 : i32, i32, i32
  }
  func.func @transform_7(%arg0: i32, %arg1: i32) -> (i32, i32, i32) {
    %c0_i32 = arith.constant 0 : i32
    %c0_i32_0 = arith.constant 0 : i32
    %c0_i32_1 = arith.constant 0 : i32
    return %arg1, %c0_i32, %c0_i32_0 : i32, i32, i32
  }
  func.func @transform_8(%arg0: i32, %arg1: i32) -> (i32, i32, i32) {
    %c0_i32 = arith.constant 0 : i32
    %c0_i32_0 = arith.constant 0 : i32
    %c0_i32_1 = arith.constant 0 : i32
    return %arg1, %c0_i32, %c0_i32_0 : i32, i32, i32
  }
  func.func @transform_9(%arg0: i32, %arg1: i32) -> (i32, i32, i32) {
    %c0_i32 = arith.constant 0 : i32
    %c0_i32_0 = arith.constant 0 : i32
    %c0_i32_1 = arith.constant 0 : i32
    return %arg1, %c0_i32, %c0_i32_0 : i32, i32, i32
  }
  func.func @transform_10(%arg0: i32, %arg1: i32) -> (i32, i32, i32) {
    %c0_i32 = arith.constant 0 : i32
    %c0_i32_0 = arith.constant 0 : i32
    %c0_i32_1 = arith.constant 0 : i32
    return %arg1, %c0_i32, %c0_i32_0 : i32, i32, i32
  }
  func.func @transform_11(%arg0: i32, %arg1: i32) -> (i32, i32, i32) {
    %c0_i32 = arith.constant 0 : i32
    %c0_i32_0 = arith.constant 0 : i32
    %c0_i32_1 = arith.constant 0 : i32
    return %arg1, %c0_i32, %c0_i32_0 : i32, i32, i32
  }
  func.func @transform_12(%arg0: i32, %arg1: i32) -> (i32, i32, i32) {
    %c0_i32 = arith.constant 0 : i32
    %c0_i32_0 = arith.constant 0 : i32
    %c0_i32_1 = arith.constant 0 : i32
    return %arg1, %c0_i32, %c0_i32_0 : i32, i32, i32
  }
  func.func @transform_13(%arg0: i32, %arg1: i32) -> (i32, i32) {
    %c0_i32 = arith.constant 0 : i32
    %c0_i32_0 = arith.constant 0 : i32
    %c0_i32_1 = arith.constant 0 : i32
    return %c0_i32, %c0_i32_0 : i32, i32
  }
  func.func @transform_14(%arg0: i32, %arg1: i32) -> (i32, i32) {
    %c0_i32 = arith.constant 0 : i32
    %c0_i32_0 = arith.constant 0 : i32
    %c0_i32_1 = arith.constant 0 : i32
    return %c0_i32, %c0_i32_0 : i32, i32
  }
  func.func @transform_15(%arg0: i32, %arg1: i32) -> (i32, i32, i32) {
    %c0_i32 = arith.constant 0 : i32
    %c0_i32_0 = arith.constant 0 : i32
    %c0_i32_1 = arith.constant 0 : i32
    return %arg0, %c0_i32, %c0_i32_0 : i32, i32, i32
  }
}

</mosaic_0001>

<bundles_post_ra>
// kernel: vit_forward.2
= control target key start
LH: loop header
LB: loop body
LE: loop exit
PB: predicated region body
PF: predicated region fallthrough
CT: control target
= control target key end

     0   :  { %s472_s18 = smov 0   ;;  %s516_s0 = inlined_call_operand.vmem [shape: bf16[2,16,48], index: 0, kind: input, shape index: {}]   ;;  %s517_s1 = inlined_call_operand.vmem [shape: bf16[48,32], index: 1, kind: input, shape index: {}]   ;;  %s518_s2 = inlined_call_operand.vmem [shape: f32[1,32], index: 2, kind: input, shape index: {}]   ;;  %s519_s3 = inlined_call_operand.vmem [shape: f32[1,1,32], index: 3, kind: input, shape index: {}]   ;;  %s520_s4 = inlined_call_operand.vmem [shape: f32[1,17,32], index: 4, kind: input, shape index: {}]   ;;  %s521_s5 = inlined_call_operand.vmem [shape: f32[2,24,32], index: 5, kind: output, shape index: {}]  }
   0x1 LB: > { %s386_s19 = sadd.s32 4294967295, %s438_s18   ;;  %p390_p0 = scmp.ge.s32.totalorder %s438_s18, 1  ;;  %s438_s18 = sphi %s472_s18, %s15_s18  }
   0x2   : > { %p187_p1 = scmp.lt.s32.totalorder %s438_s18, 3 }
   0x4   : > { %p188_p2 = pnand %p390_p0, %p187_p1 }
   0x5   : > { %p215_p3 = scmp.lt.s32.totalorder (!%p188_p2), %s386_s19, 1 }
   0x6   : > { %191 = sbr.rel (%p188_p2) target bundleno = 229 (0xe5), region = 40 }
   0xb   : > { %v428_v0 = vld [vmem:[%s517_s1 + $0x10] sm:$0xff]   ;;  %v440_v1 = vmov 0.0   ;;  %v429_v2 = vld [vmem:[%s517_s1 + $0x8] sm:$0xff]   ;;  %vm441_vm0 = vmmov 0   ;;  %s523_s19 = smov (!%p215_p3, %s386_s19), 1  ;;  %v430_v3 = vld [vmem:[%s517_s1] sm:$0xff]  }
   0xc   : > { %407 = vmatprep.subr.bf16.mxu0 %v440_v1  ;;  %413 = vmatprep.mubr.msk.bf16.mxu0 %vm441_vm0, %v440_v1  ;;  %s402_s26 = sshll.u32 %s523_s19, 3  ;;  %vm264_vm1 = vcmask 392192   ;;  %v394_v5 = vld [vmem:[%s518_s2] ss:$0 sm:$0xff]  ;;  %s417_s7 = smul.u32 24, %s523_s19  ;;  %vm312_vm2 = vcmask 1040384  }
   0xd   : > { %408 = vmatpush3.bf16.msra.mxu0 %v428_v0  ;;  %s219_s29 = scalar_lea.vmem %s516_s0, %s402_s26  ;;  %v309_v8 = vld [vmem:[%s519_s3] sm:$0x1]  ;;  %vm327_vm3 = vcmask 261120   ;;  %v322_v16 = vld [vmem:[%s520_s4 + $0x10] sm:$0x1]  ;;  %v321_v19 = vld [vmem:[%s520_s4 + $0x8] sm:$0xff] }
   0xe   : > { %409 = vmatprep.subr.bf16.mxu0 %v440_v1  ;;  %v431_v4 = vld [vmem:[%s219_s29] sm:$0xff]   ;;  %s224_s14 = scalar_lea.vmem %s521_s5, %s417_s7 }
   0xf   : > { %v320_v11 = vld [vmem:[%s520_s4] sm:$0xff] }
  0x11   : > { %410 = vmatpush3.bf16.msra.mxu0 %v429_v2 }
  0x12   : > { %411 = vmatprep.subr.bf16.mxu0 %v440_v1 }
  0x15   : > { %412 = vmatpush3.bf16.msra.mxu0 %v430_v3 }
  0x18   : > { %414 = vmatmul.mubr.msk.bf16.vlgmr.msra.gmra.mxu0 %vm264_vm1, %v431_v4 }
  0xd8   : > { %v302_v6 = vpop.f32.mrf.mxu0 }
  0xd9   : > { %v303_v7 = vadd.f32 %v394_v5, %v302_v6 }
  0xda   : > { %v415_v9 = vpop.f32.mrf.mxu0 }
  0xdb   : > { %v313_v10 = vrot.slane %v303_v7, 7 }
  0xdc   : > { %v305_v12 = vpop.f32.mrf.mxu0 }
  0xdd   : > { %v319_v13 = vsel %vm312_vm2, %v309_v8, %v313_v10  ;;  %v306_v14 = vadd.f32 %v394_v5, %v305_v12 }
  0xde   : > { %v323_v15 = vadd.f32 %v320_v11, %v319_v13  ;;  %v416_v17 = vpop.f32.mrf.mxu0 }
  0xdf   : > { %v314_v18 = vrot.slane %v306_v14, 7 }
  0xe0   : > { %328 = vst.msk [vmem:[%s224_s14] sm:$0xff] %vm327_vm3, %v323_v15 }
  0xe1   : > { %v315_v20 = vsel %vm312_vm2, %v313_v10, %v314_v18  ;;  %v325_v21 = vadd.f32 %v322_v16, %v314_v18 }
  0xe2   : > { %v324_v22 = vadd.f32 %v321_v19, %v315_v20 }
  0xe3   : > { %v326_v23 = vsel %vm312_vm2, %v325_v21, 0.0 }
  0xe4   : > { %329 = vst.msk [vmem:[%s224_s14 + $0x8] sm:$0xff] %vm327_vm3, %v324_v22  ;;  %330 = vst.msk [vmem:[%s224_s14 + $0x10] sm:$0xff] %vm327_vm3, %v326_v23 }
  0xe5 PF: > { %s15_s18 = sadd.s32 1, %s438_s18  }
  0xe6   : > { %p12_p4 = scmp.ge.s32.totalorder %s15_s18, 4  }
  0xe8   :  { %14 = sbr.rel (!%p12_p4) target bundleno = 1 (0x1), region = 70 }

// kernel: vit_forward.3
= control target key start
LH: loop header
LB: loop body
LE: loop exit
PB: predicated region body
PF: predicated region fallthrough
CT: control target
= control target key end

     0   :  { %s2701_s18 = smov 0   ;;  %s2703_s19 = smov 0   ;;  %s3128_s0 = inlined_call_operand.vmem [shape: f32[2,24,32], index: 0, kind: input, shape index: {}]   ;;  %s3129_s1 = inlined_call_operand.vmem [shape: f32[2,1,32], index: 1, kind: input, shape index: {}]   ;;  %s3130_s2 = inlined_call_operand.vmem [shape: f32[2,1,32], index: 2, kind: input, shape index: {}]   ;;  %s3131_s3 = inlined_call_operand.vmem [shape: bf16[2,32,96], index: 3, kind: input, shape index: {}]   ;;  %s3132_s4 = inlined_call_operand.vmem [shape: f32[2,1,96], index: 4, kind: input, shape index: {}]   ;;  %s3133_s5 = inlined_call_operand.vmem [shape: bf16[2,32,32], index: 5, kind: input, shape index: {}]   ;;  %s3134_s6 = inlined_call_operand.vmem [shape: f32[2,1,32], index: 6, kind: input, shape index: {}]   ;;  %s3135_s7 = inlined_call_operand.vmem [shape: f32[2,1,32], index: 7, kind: input, shape index: {}]   ;;  %s3136_s8 = inlined_call_operand.vmem [shape: f32[2,1,32], index: 8, kind: input, shape index: {}]   ;;  %s3137_s9 = inlined_call_operand.vmem [shape: bf16[2,32,128], index: 9, kind: input, shape index: {}]   ;;  %s3138_s10 = inlined_call_operand.vmem [shape: f32[2,1,128], index: 10, kind: input, shape index: {}]   ;;  %s3139_s11 = inlined_call_operand.vmem [shape: bf16[2,128,32], index: 11, kind: input, shape index: {}]   ;;  %s3140_s12 = inlined_call_operand.vmem [shape: f32[2,1,32], index: 12, kind: input, shape index: {}]   ;;  %s3141_s13 = inlined_call_operand.vmem [shape: f32[1,32], index: 13, kind: input, shape index: {}]   ;;  %s3142_s14 = inlined_call_operand.vmem [shape: f32[1,32], index: 14, kind: input, shape index: {}]   ;;  %s3143_s15 = inlined_call_operand.vmem [shape: f32[2,24,32], index: 15, kind: output, shape index: {}]  }
   0x1   :  { %3148 = sst [smem:[#allocation8_spill]] %s3128_s0  ;;  %s2705_s20 = smov 0  }
   0x2   :  { %3149 = sst [smem:[#allocation9_spill]] %s3130_s2  ;;  %s2707_s21 = smov 0  }
   0x3   :  { %3150 = sst [smem:[#allocation10_spill]] %s3131_s3  ;;  %s2709_s22 = smov 0  }
   0x4   :  { %3151 = sst [smem:[#allocation11_spill]] %s3133_s5 }
   0x5   :  { %3152 = sst [smem:[#allocation12_spill]] %s3141_s13 }
   0x6   :  { %3153 = sst [smem:[#allocation13_spill]] %s3142_s14 }
   0x7   :  { %3154 = sst [smem:[#allocation14_spill]] %s3143_s15 }
   0x8 LB: > { %3155 = sst [smem:[#allocation2_spill]] %s2589_s18  ;;  %s34_s23 = sadd.s32 1, %s2597_s20  ;;  %s2605_s22 = sphi %s2709_s22, %s25_s22   ;;  %s2601_s21 = sphi %s2707_s21, %s3181_s21   ;;  %s2597_s20 = sphi %s2705_s20, %s3180_s20   ;;  %s2593_s19 = sphi %s2703_s19, %s3179_s19   ;;  %s2589_s18 = sphi %s2701_s18, %s3178_s18  }
   0x9   : > { %3156 = sst [smem:[#allocation3_spill]] %s2597_s20  ;;  %s37_s24 = sadd.s32 1, %s2601_s21 }
   0xa   : > { %3157 = sst [smem:[#allocation4_spill]] %s2601_s21  ;;  %p35_p0 = scmp.ge.s32.totalorder %s34_s23, 2 }
   0xb   : > { %3158 = sst [smem:[#allocation5_spill]] %s2605_s22  ;;  %p2187_p1 = scmp.ge.s32.totalorder %s2605_s22, 1 }
   0xc   : > { %p553_p2 = scmp.lt.s32.totalorder %s2605_s22, 5  ;;  %s3183_s23 = smov (%p35_p0, %s34_s23), 0 }
   0xd   : > { %3159 = sst [smem:[#allocation6_spill]] %s3183_s23  ;;  %s3185_s24 = smov (!%p35_p0, %s37_s24), %s2601_s21 }
   0xe   : > { %p554_p3 = pnand %p2187_p1, %p553_p2  ;;  %p39_p4 = scmp.ge.s32.totalorder %s3185_s24, 2 }
   0xf   : > { %p645_p5 = scmp.lt.s32.totalorder (!%p554_p3), %s2593_s19, 1  ;;  %p650_p6 = scmp.lt.s32.totalorder (!%p554_p3), %s2589_s18, 1 }
  0x10   : > { %s3187_s24 = smov (%p39_p4, %s3185_s24), 0  ;;  %557 = sbr.rel (%p554_p3) target bundleno = 3760 (0xeb0), region = 80 }
  0x11   : > { %3160 = sst [smem:[#allocation7_spill]] %s3187_s24 }
  0x12   : > { %s3162_s0 = sld [smem:[#allocation8_spill]] (!%p554_p3) }
  0x13   : > { %s3163_s3 = sld [smem:[#allocation10_spill]] (!%p554_p3) }
  0x14   : > { %s3164_s5 = sld [smem:[#allocation11_spill]] (!%p554_p3) }
  0x15   : > { %s3189_s19 = smov (!%p645_p5, %s2593_s19), 1 }
  0x16   : > { %s2735_s25 = scalar_select %p650_p6, %s2589_s18, 1 }
  0x17   : > { %s2426_s26 = smul.u32 24, %s3189_s19 }
  0x18   : > { %s2248_s20 = sshll.u32 %s2735_s25, 4  ;;  %s685_s15 = scalar_lea.vmem %s3138_s10, %s2735_s25 }
  0x19   : > { %s649_s21 = scalar_lea.vmem %s3162_s0, %s2426_s26  ;;  %s2752_s13 = scalar_lea.vmem %s3163_s3, %s2248_s20 }
  0x1a   : > { %s2761_s29 = scalar_lea.vmem %s3164_s5, %s2248_s20  ;;  %s2778_s19 = scalar_lea.vmem %s3137_s9, %s2248_s20 }
  0x1b   : > { %s2251_s5 = sshll.u32 %s2735_s25, 6  ;;  %s693_s23 = scalar_lea.vmem %s3140_s12, %s2735_s25 }
  0x1c   : > { %s2792_s0 = scalar_lea.vmem %s3139_s11, %s2251_s5  ;;  %s3165_s3 = sld [smem:[#allocation14_spill]] }
  0x1d   : > { %s3166_s20 = sld [smem:[#allocation2_spill]] }
  0x22   : > { %s2797_s2 = scalar_lea.vmem %s3165_s3, %s2426_s26 }
  0x23   : > { %p2198_p7 = scmp.ne.s32.totalorder %s3166_s20, 0 }
  0x25   : > { %703 = sbr.rel (%p2198_p7) target bundleno = 45 (0x2d), region = 84 }
  0x2a   : > { %v704_v0 = vld [vmem:[%s649_s21] sm:$0xff]  ;;  %vm707_vm0 = vcmask 261120   ;;  %v705_v1 = vld [vmem:[%s649_s21 + $0x8] sm:$0xff]  ;;  %v706_v2 = vld [vmem:[%s649_s21 + $0x10] sm:$0xff] }
  0x2b   : > { %708 = vst.msk [vmem:[%s2797_s2] sm:$0xff] %vm707_vm0, %v704_v0  ;;  %709 = vst.msk [vmem:[%s2797_s2 + $0x8] sm:$0xff] %vm707_vm0, %v705_v1 }
  0x2c   : > { %710 = vst.msk [vmem:[%s2797_s2 + $0x10] sm:$0xff] %vm707_vm0, %v706_v2 }
  0x2d PF: > { %vm716_vm1 = vcmask 261120   ;;  %v2481_v24 = vld [vmem:[%s2752_s13 + $0x8] sm:$0xff]   ;;  %v2482_v25 = vld [vmem:[%s2752_s13] sm:$0xff]   ;;  %s3167_s13 = scalar_lea.vmem %s3129_s1, %s2735_s25  ;;  %s3168_s18 = sld [smem:[#allocation9_spill]]  ;;  %vm865_vm2 = vcmask 64512   ;;  %vm970_vm3 = vcmask 1043456  }
  0x2e   : > { %2306 = vmatprep.subr.bf16.mxu0 %v2481_v24  ;;  %v2199_v37 = vld [vmem:[%s3167_s13] ss:$0 sm:$0xff]  ;;  %s3170_s16 = scalar_lea.vmem %s3132_s4, %s2735_s25  ;;  %s2607_s17 = smov 96   ;;  %vm929_vm5 = vcmask 195584   ;;  %vm1564_vm6 = vcmask 130048  }
  0x2f   : > { %2307 = vmatpush3.bf16.msra.mxu0 %v2481_v24  ;;  %v2201_v51 = vld [vmem:[%s3170_s16] ss:$0 sm:$0xff]  ;;  %s2608_s24 = smov 64   ;;  %s2609_s14 = smov 88  }
  0x30   : > { %2308 = vmatprep.subr.bf16.mxu0 %v2482_v25  ;;  %s2610_s22 = smov 120   ;;  %s2611_s20 = smov 56  }
  0x31   : > { %s2612_s3 = smov 80   ;;  %s2613_s5 = smov 112  }
  0x32   : > { %v2804_v3 = vld [vmem:[%s2797_s2] sm:$0xff]  ;;  %v2810_v5 = vld [vmem:[%s2797_s2 + $0x8] sm:$0xff]  ;;  %s2614_s13 = smov 48   ;;  %s2615_s21 = smov 72  }
  0x33   : > { %v2807_v4 = vld [vmem:[%s2797_s2 + $0x10] sm:$0xff]  ;;  %v717_v6 = vsel %vm716_vm1, %v2804_v3, 0.0  ;;  %v720_v8 = vsel %vm716_vm1, %v2810_v5, 0.0  ;;  %2309 = vmatpush3.bf16.msra.mxu0 %v2482_v25  ;;  %s3169_s27 = scalar_lea.vmem %s3168_s18, %s2735_s25  ;;  %s2616_s26 = smov 104  }
  0x34   : > { %v723_v7 = vsel %vm716_vm1, %v2807_v4, 0.0  ;;  %718 = vadd.xlane.f32.xlu0 %v717_v6  ;;  %v2200_v43 = vld [vmem:[%s3169_s27] ss:$0 sm:$0xff]  ;;  %v854_v6 = vlaneseq  ;;  %s2617_s18 = smov 40   ;;  %s2618_s27 = smov 8  }
  0x35   : > { %724 = vadd.xlane.f32.xlu1 %v723_v7  ;;  %s2619_s28 = smov 16   ;;  %s2620_s30 = smov 24  }
  0x36   : > { %v2861_v7 = vand.u32 127, %v854_v6 }
  0x38   : > { %721 = vadd.xlane.f32.xlu0 %v720_v8  ;;  %vm856_vm4 = vcmp.lt.s32.totalorder %v2861_v7, 17 }
  0xbd   : > { %v719_v9 = vpop.xlane.xlu0 %718 }
  0xbe   : > { %v725_v10 = vpop.xlane.xlu1 %724  ;;  %v727_v11 = vmul.f32 0.03125, %v719_v9 }
  0xbf   : > { %v729_v12 = vmul.f32 0.03125, %v725_v10 }
  0xc0   : > { %v730_v13 = vsub.f32 %v2804_v3, %v727_v11 }
  0xc1   : > { %v732_v14 = vsub.f32 %v2807_v4, %v729_v12  ;;  %v722_v15 = vpop.xlane.xlu0 %721 }
  0xc2   : > { %v728_v16 = vmul.f32 0.03125, %v722_v15  ;;  %v733_v17 = vmul.f32 %v730_v13, %v730_v13 }
  0xc3   : > { %v735_v18 = vmul.f32 %v732_v14, %v732_v14 }
  0xc4   : > { %v731_v19 = vsub.f32 %v2810_v5, %v728_v16  ;;  %v736_v20 = vsel %vm716_vm1, %v733_v17, 0.0 }
  0xc5   : > { %737 = vadd.xlane.f32.xlu1 %v736_v20  ;;  %v742_v21 = vsel %vm716_vm1, %v735_v18, 0.0 }
  0xc6   : > { %v734_v22 = vmul.f32 %v731_v19, %v731_v19 }
  0xc8   : > { %v739_v23 = vsel %vm716_vm1, %v734_v22, 0.0 }
  0xc9   : > { %743 = vadd.xlane.f32.xlu1 %v742_v21  ;;  %740 = vadd.xlane.f32.xlu0 %v739_v23 }
 0x14e   : > { %v738_v26 = vpop.xlane.xlu1 %737 }
 0x14f   : > { %v745_v27 = vmul.f32 0.03125, %v738_v26 }
 0x151   : > { %v748_v28 = vadd.f32 1e-05, %v745_v27 }
 0x152   : > { %v744_v29 = vpop.xlane.xlu1 %743  ;;  %v741_v30 = vpop.xlane.xlu0 %740 }
 0x153   : > { %2495 = vrsqrt.f32 %v748_v28  ;;  %v747_v31 = vmul.f32 0.03125, %v744_v29  ;;  %v746_v32 = vmul.f32 0.03125, %v741_v30 }
 0x155   : > { %v750_v33 = vadd.f32 1e-05, %v747_v31  ;;  %v749_v34 = vadd.f32 1e-05, %v746_v32 }
 0x157   : > { %2497 = vrsqrt.f32 %v750_v33 }
 0x158   : > { %2499 = vrsqrt.f32 %v749_v34 }
 0x160   : > { %v2496_v35 = vpop.eup %2495 }
 0x161   : > { %v754_v36 = vmul.f32 %v2496_v35, %v730_v13 }
 0x163   : > { %v763_v42 = vmul.f32 %v2199_v37, %v754_v36 }
 0x164   : > { %v2498_v38 = vpop.eup %2497 }
 0x165   : > { %v2500_v39 = vpop.eup %2499  ;;  %v756_v40 = vmul.f32 %v2498_v38, %v732_v14  ;;  %v772_v47 = vadd.f32 %v2200_v43, %v763_v42 }
 0x166   : > { %v755_v41 = vmul.f32 %v2500_v39, %v731_v19 }
 0x167   : > { %v765_v44 = vmul.f32 %v2199_v37, %v756_v40 }
 0x168   : > { %v764_v45 = vmul.f32 %v2199_v37, %v755_v41 }
 0x169   : > { %v774_v46 = vadd.f32 %v2200_v43, %v765_v44 }
 0x16a   : > { %v773_v48 = vadd.f32 %v2200_v43, %v764_v45 }
 0x16b   : > { %v776_v49 = vpack.c.bf16 %v774_v46, %v774_v46 }
 0x16c   : > { %v775_v50 = vpack.c.bf16 %v773_v48, %v772_v47 }
 0x16e   : > { %2310 = vmatprep.mubr.msk.bf16.mxu0 %vm716_vm1, %v775_v50 }
 0x16f   : > { %2311 = vmatmul.mubr.msk.bf16.vlgmr.msra.gmra.mxu0 %vm716_vm1, %v776_v49 }
 0x22f   : > { %v2312_v52 = vpop.f32.mrf.mxu0 }
 0x230   : > { %v849_v53 = vadd.f32 %v2312_v52, %v2201_v51 }
 0x231   : > { %v840_v54 = vpop.f32.mrf.mxu0 }
 0x232   : > { %v2843_v55 = vpack.c.bf16 %v849_v53, %v849_v53  ;;  %v841_v58 = vadd.f32 %v2201_v51, %v840_v54 }
 0x233   : > { %v2313_v56 = vpop.f32.mrf.mxu0 }
 0x234   : > { %863 = vrot.lane.b32.xlu0 %v2843_v55, %s2607_s17 }
 0x235   : > { %v843_v57 = vpop.f32.mrf.mxu0 }
 0x236   : > { %v844_v59 = vadd.f32 %v2201_v51, %v843_v57 }
 0x238   : > { %v2846_v60 = vpack.c.bf16 %v844_v59, %v841_v58 }
 0x23a   : > { %861 = vrot.lane.b32.xlu1 %v2846_v60, %s2607_s17  ;;  %2318 = vmatprep.mubr.msk.bf16.mxu0 %vm865_vm2, %v2846_v60  ;;  %s3171_s17 = scalar_lea.vmem %s3134_s6, %s2735_s25 }
 0x23e   : > { %961 = vrot.lane.b32.xlu1 %v2843_v55, %s2608_s24 }
 0x2a6   : > { %v864_v61 = vpop.permute.xlu0 %863 }
 0x2a7   : > { %v876_v62 = vsel %vm865_vm2, %v864_v61, 0  ;;  %2414 = vmatprep.subr.msk.bf16.mxu0 %vm865_vm2, %v864_v61 }
 0x2a8   : > { %2315 = vmatpush3.bf16.xpose.msra.mxu0 %v876_v62 }
 0x2ac   : > { %v862_v63 = vpop.permute.xlu1 %861 }
 0x2ad   : > { %2415 = vmatprep.subr.msk.bf16.mxu0 %vm865_vm2, %v862_v63  ;;  %v873_v0 = vsel %vm865_vm2, %v862_v63, 0 }
 0x2b0   : > { %2317 = vmatpush3.bf16.xpose.msra.mxu0 %v873_v0  ;;  %v962_v1 = vpop.permute.xlu1 %961 }
 0x2b1   : > { %2416 = vmatprep.subr.msk.bf16.mxu0 %vm970_vm3, %v962_v1  ;;  %v972_v2 = vsel %vm970_vm3, %v962_v1, 0 }
 0x2b7   : > { %2319 = vmatmul.mubr.msk.bf16.vlgmr.msra.gmra.mxu0 %vm865_vm2, %v2843_v55 }
 0x2b8   : > { %2323 = vmatpush3.bf16.msra.mxu0 %v972_v2 }
 0x377   : > { %v2320_v8 = vpop.f32.mrf.mxu0 }
 0x378   : > { %v928_v9 = vsel %vm856_vm4, %v2320_v8, -1e+30 }
 0x379   : > { %v912_v10 = vpop.f32.mrf.mxu0  ;;  %v936_v11 = vsel %vm929_vm5, %v928_v9, -inf }
 0x37a   : > { %v926_v12 = vsel %vm856_vm4, %v912_v10, -1e+30  ;;  %937 = vmax.xlane.f32.xlu0 %v936_v11 }
 0x37b   : > { %v2321_v13 = vpop.f32.mrf.mxu0  ;;  %v930_v14 = vsel %vm929_vm5, %v926_v12, -inf }
 0x37c   : > { %931 = vmax.xlane.f32.xlu1 %v930_v14 }
 0x37d   : > { %v915_v15 = vpop.f32.mrf.mxu0 }
 0x37e   : > { %v927_v16 = vsel %vm856_vm4, %v915_v15, -1e+30 }
 0x37f   : > { %v933_v17 = vsel %vm929_vm5, %v927_v16, -inf }
 0x380   : > { %934 = vmax.xlane.f32.xlu0 %v933_v17 }
 0x38d   : > { %1036 = vrot.lane.b32.xlu1 %v2843_v55, %s2609_s14 }
 0x391   : > { %1034 = vrot.lane.b32.xlu1 %v2846_v60, %s2609_s14  ;;  %s3172_s14 = scalar_lea.vmem %s3135_s7, %s2735_s25 }
 0x395   : > { %1030 = vrot.lane.b32.xlu1 %v2846_v60, %s2610_s22 }
 0x396   : > { %959 = vrot.lane.b32.xlu0 %v2846_v60, %s2608_s24 }
 0x39a   : > { %1032 = vrot.lane.b32.xlu0 %v2843_v55, %s2610_s22 }
 0x403   : > { %v938_v18 = vpop.xlane.xlu0 %937 }
 0x404   : > { %v941_v19 = vsub.f32 %v928_v9, %v938_v18 }
 0x405   : > { %v932_v20 = vpop.xlane.xlu1 %931 }
 0x406   : > { %v939_v21 = vsub.f32 %v926_v12, %v932_v20  ;;  %v946_v22 = vmul.f32 1.442695, %v941_v19 }
 0x408   : > { %v942_v23 = vmul.f32 1.442695, %v939_v21  ;;  %2501 = vpow2.f32 %v946_v22 }
 0x409   : > { %v935_v24 = vpop.xlane.xlu0 %934  ;;  %v1037_v28 = vpop.permute.xlu1 %1036 }
 0x40a   : > { %v940_v25 = vsub.f32 %v927_v16, %v935_v24  ;;  %2503 = vpow2.f32 %v942_v23  ;;  %v1048_v35 = vsel %vm865_vm2, %v1037_v28, 0 }
 0x40c   : > { %v944_v26 = vmul.f32 1.442695, %v940_v25 }
 0x40d   : > { %v960_v27 = vpop.permute.xlu0 %959  ;;  %v1035_v30 = vpop.permute.xlu1 %1034 }
 0x40e   : > { %2505 = vpow2.f32 %v944_v26  ;;  %2324 = vmatprep.subr.bf16.mxu0 %v960_v27  ;;  %v1045_v37 = vsel %vm865_vm2, %v1035_v30, 0 }
 0x40f   : > { %2325 = vmatpush3.bf16.msra.mxu0 %v960_v27 }
 0x410   : > { %2417 = vmatprep.subr.msk.bf16.mxu0 %vm865_vm2, %v1037_v28 }
 0x411   : > { %v1031_v36 = vpop.permute.xlu1 %1030  ;;  %v1033_v38 = vpop.permute.xlu0 %1032 }
 0x415   : > { %v2880_v29 = vpop.eup %2501 }
 0x416   : > { %v958_v34 = vpack.c.bf16 %v2880_v29, %v2880_v29 }
 0x417   : > { %v2882_v31 = vpop.eup %2503 }
 0x41b   : > { %v2884_v32 = vpop.eup %2505 }
 0x41c   : > { %v957_v33 = vpack.c.bf16 %v2884_v32, %v2882_v31 }
 0x41e   : > { %2326 = vmatprep.mubr.msk.bf16.mxu0 %vm929_vm5, %v957_v33 }
 0x41f   : > { %2327 = vmatmul.mubr.msk.bf16.vlgmr.msra.gmra.mxu0 %vm929_vm5, %v958_v34 }
 0x420   : > { %2331 = vmatpush3.bf16.xpose.msra.mxu0 %v1048_v35  ;;  %2334 = vmatprep.mubr.msk.bf16.mxu0 %vm865_vm2, %v1031_v36 }
 0x421   : > { %2418 = vmatprep.subr.msk.bf16.mxu0 %vm865_vm2, %v1035_v30 }
 0x428   : > { %2333 = vmatpush3.bf16.xpose.msra.mxu0 %v1045_v37 }
 0x42f   : > { %2335 = vmatmul.mubr.msk.bf16.vlgmr.msra.gmra.mxu0 %vm865_vm2, %v1033_v38 }
 0x4df   : > { %v2897_v39 = vpop.f32.mrf.mxu0 }
 0x4e1   : > { %v2899_v40 = vpop.f32.mrf.mxu0 }
 0x4e3   : > { %v2329_v41 = vpop.f32.mrf.mxu0 }
 0x4e5   : > { %v2901_v42 = vpop.f32.mrf.mxu0 }
 0x4ef   : > { %v2336_v43 = vpop.f32.mrf.mxu0 }
 0x4f0   : > { %v1100_v44 = vsel %vm856_vm4, %v2336_v43, -1e+30 }
 0x4f1   : > { %v1084_v45 = vpop.f32.mrf.mxu0  ;;  %v1107_v46 = vsel %vm929_vm5, %v1100_v44, -inf }
 0x4f2   : > { %v1098_v47 = vsel %vm856_vm4, %v1084_v45, -1e+30  ;;  %1108 = vmax.xlane.f32.xlu0 %v1107_v46 }
 0x4f3   : > { %v2337_v48 = vpop.f32.mrf.mxu0  ;;  %v1101_v49 = vsel %vm929_vm5, %v1098_v47, -inf }
 0x4f4   : > { %1102 = vmax.xlane.f32.xlu1 %v1101_v49 }
 0x4f5   : > { %v1087_v50 = vpop.f32.mrf.mxu0 }
 0x4f6   : > { %v1099_v51 = vsel %vm856_vm4, %v1087_v50, -1e+30 }
 0x4f7   : > { %v1104_v52 = vsel %vm929_vm5, %v1099_v51, -inf }
 0x4f8   : > { %1105 = vmax.xlane.f32.xlu0 %v1104_v52 }
 0x505   : > { %1130 = vrot.lane.b32.xlu1 %v2846_v60, %s2611_s20 }
 0x509   : > { %1206 = vrot.lane.b32.xlu1 %v2843_v55, %s2612_s3 }
 0x50d   : > { %1204 = vrot.lane.b32.xlu1 %v2846_v60, %s2612_s3  ;;  %s3173_s3 = scalar_lea.vmem %s3136_s8, %s2735_s25  ;;  %s3174_s25 = sld [smem:[#allocation2_spill]] }
 0x50e   : > { %1132 = vrot.lane.b32.xlu0 %v2843_v55, %s2611_s20 }
 0x511   : > { %1202 = vrot.lane.b32.xlu1 %v2843_v55, %s2613_s5 }
 0x512   : > { %1200 = vrot.lane.b32.xlu0 %v2846_v60, %s2613_s5 }
 0x513   : > { %p2243_p8 = scmp.ne.s32.totalorder %s3174_s25, 1 }
 0x515   : > { %1300 = vrot.lane.b32.xlu1 %v2846_v60, %s2614_s13 }
 0x57b   : > { %v1109_v53 = vpop.xlane.xlu0 %1108 }
 0x57c   : > { %v1112_v54 = vsub.f32 %v1100_v44, %v1109_v53 }
 0x57d   : > { %v1103_v56 = vpop.xlane.xlu1 %1102 }
 0x57e   : > { %v1110_v57 = vsub.f32 %v1098_v47, %v1103_v56  ;;  %v1117_v58 = vmul.f32 1.442695, %v1112_v54 }
 0x580   : > { %v1113_v59 = vmul.f32 1.442695, %v1110_v57  ;;  %2507 = vpow2.f32 %v1117_v58 }
 0x581   : > { %v1106_v61 = vpop.xlane.xlu0 %1105  ;;  %v1131_v0 = vpop.permute.xlu1 %1130 }
 0x582   : > { %v1111_v62 = vsub.f32 %v1099_v51, %v1106_v61  ;;  %2509 = vpow2.f32 %v1113_v59 }
 0x584   : > { %v1115_v63 = vmul.f32 1.442695, %v1111_v62 }
 0x585   : > { %v1133_v1 = vpop.permute.xlu0 %1132  ;;  %v1207_v6 = vpop.permute.xlu1 %1206 }
 0x586   : > { %2511 = vpow2.f32 %v1115_v63  ;;  %2419 = vmatprep.subr.msk.bf16.mxu1 %vm970_vm3, %v1133_v1  ;;  %v1142_v2 = vsel %vm970_vm3, %v1133_v1, 0  ;;  %v1218_v13 = vsel %vm865_vm2, %v1207_v6, 0 }
 0x587   : > { %2339 = vmatpush3.bf16.msra.mxu1 %v1142_v2 }
 0x588   : > { %2340 = vmatprep.subr.bf16.mxu1 %v1131_v0 }
 0x589   : > { %v1201_v14 = vpop.permute.xlu0 %1200  ;;  %v1205_v15 = vpop.permute.xlu1 %1204 }
 0x58a   : > { %v1215_v16 = vsel %vm865_vm2, %v1205_v15, 0 }
 0x58b   : > { %2341 = vmatpush3.bf16.msra.mxu1 %v1131_v0 }
 0x58c   : > { %2420 = vmatprep.subr.msk.bf16.mxu1 %vm865_vm2, %v1207_v6 }
 0x58d   : > { %v2923_v8 = vpop.eup %2507  ;;  %v1203_v17 = vpop.permute.xlu1 %1202 }
 0x58e   : > { %v1129_v12 = vpack.c.bf16 %v2923_v8, %v2923_v8 }
 0x58f   : > { %v2925_v9 = vpop.eup %2509 }
 0x591   : > { %v1301_v37 = vpop.permute.xlu1 %1300 }
 0x593   : > { %v2927_v10 = vpop.eup %2511 }
 0x594   : > { %v1128_v11 = vpack.c.bf16 %v2927_v10, %v2925_v9 }
 0x596   : > { %2342 = vmatprep.mubr.msk.bf16.mxu1 %vm929_vm5, %v1128_v11 }
 0x597   : > { %2343 = vmatmul.mubr.msk.bf16.vlgmr.msra.gmra.mxu1 %vm929_vm5, %v1129_v12 }
 0x598   : > { %2347 = vmatpush3.bf16.xpose.msra.mxu1 %v1218_v13  ;;  %2350 = vmatprep.mubr.msk.bf16.mxu1 %vm865_vm2, %v1201_v14 }
 0x599   : > { %2421 = vmatprep.subr.msk.bf16.mxu1 %vm865_vm2, %v1205_v15 }
 0x5a0   : > { %2349 = vmatpush3.bf16.xpose.msra.mxu1 %v1215_v16 }
 0x5a7   : > { %2351 = vmatmul.mubr.msk.bf16.vlgmr.msra.gmra.mxu1 %vm865_vm2, %v1203_v17 }
 0x657   : > { %v2940_v18 = vpop.f32.mrf.mxu1 }
 0x659   : > { %v2942_v19 = vpop.f32.mrf.mxu1 }
 0x65b   : > { %v2345_v20 = vpop.f32.mrf.mxu1 }
 0x65d   : > { %v2944_v21 = vpop.f32.mrf.mxu1 }
 0x667   : > { %v2352_v22 = vpop.f32.mrf.mxu1 }
 0x668   : > { %v1270_v23 = vsel %vm856_vm4, %v2352_v22, -1e+30 }
 0x669   : > { %v1254_v24 = vpop.f32.mrf.mxu1  ;;  %v1277_v25 = vsel %vm929_vm5, %v1270_v23, -inf }
 0x66a   : > { %v1268_v26 = vsel %vm856_vm4, %v1254_v24, -1e+30  ;;  %1278 = vmax.xlane.f32.xlu0 %v1277_v25  ;;  %v1122_v25 = vsel %vm929_vm5, %v2927_v10, 0.0 }
 0x66b   : > { %v2353_v27 = vpop.f32.mrf.mxu1  ;;  %v1271_v30 = vsel %vm929_vm5, %v1268_v26, -inf }
 0x66d   : > { %v1257_v28 = vpop.f32.mrf.mxu1 }
 0x66e   : > { %v1269_v33 = vsel %vm856_vm4, %v1257_v28, -1e+30  ;;  %1272 = vmax.xlane.f32.xlu0 %v1271_v30 }
 0x66f   : > { %v1274_v34 = vsel %vm929_vm5, %v1269_v33, -inf }
 0x670   : > { %1275 = vmax.xlane.f32.xlu1 %v1274_v34 }
 0x681   : > { %1376 = vrot.lane.b32.xlu1 %v2843_v55, %s2615_s21 }
 0x684   : > { %1302 = vrot.lane.b32.xlu0 %v2843_v55, %s2614_s13 }
 0x685   : > { %1370 = vrot.lane.b32.xlu1 %v2846_v60, %s2616_s26 }
 0x688   : > { %1374 = vrot.lane.b32.xlu0 %v2846_v60, %s2615_s21 }
 0x68c   : > { %1372 = vrot.lane.b32.xlu0 %v2843_v55, %s2616_s26  ;;  %s3175_s26 = sld [smem:[#allocation12_spill]] (!%p2243_p8) }
 0x6f3   : > { %v1279_v35 = vpop.xlane.xlu0 %1278 }
 0x6f4   : > { %v1282_v36 = vsub.f32 %v1270_v23, %v1279_v35  ;;  %v1119_v23 = vsel %vm929_vm5, %v2925_v9, 0.0 }
 0x6f6   : > { %v1287_v41 = vmul.f32 1.442695, %v1282_v36 }
 0x6f7   : > { %v1273_v38 = vpop.xlane.xlu0 %1272 }
 0x6f8   : > { %v1280_v43 = vsub.f32 %v1268_v26, %v1273_v38  ;;  %2513 = vpow2.f32 %v1287_v41  ;;  %v1125_v26 = vsel %vm929_vm5, %v2923_v8, 0.0 }
 0x6f9   : > { %v1276_v44 = vpop.xlane.xlu1 %1275 }
 0x6fa   : > { %v1283_v45 = vmul.f32 1.442695, %v1280_v43  ;;  %v1281_v46 = vsub.f32 %v1269_v33, %v1276_v44 }
 0x6fb   : > { %v1303_v47 = vpop.permute.xlu0 %1302 }
 0x6fc   : > { %v1285_v48 = vmul.f32 1.442695, %v1281_v46  ;;  %v1312_v49 = vsel %vm970_vm3, %v1303_v47, 0  ;;  %2422 = vmatprep.subr.msk.bf16.mxu0 %vm970_vm3, %v1303_v47  ;;  %2515 = vpow2.f32 %v1283_v45 }
 0x6fd   : > { %2355 = vmatpush3.bf16.msra.mxu0 %v1312_v49  ;;  %v1377_v50 = vpop.permute.xlu1 %1376  ;;  %v951_v49 = vsel %vm929_vm5, %v2884_v32, 0.0 }
 0x6fe   : > { %2517 = vpow2.f32 %v1285_v48  ;;  %2356 = vmatprep.subr.bf16.mxu0 %v1301_v37  ;;  %v1388_v57 = vsel %vm865_vm2, %v1377_v50, 0 }
 0x6ff   : > { %v1375_v59 = vpop.permute.xlu0 %1374 }
 0x700   : > { %v1385_v61 = vsel %vm865_vm2, %v1375_v59, 0 }
 0x701   : > { %2357 = vmatpush3.bf16.msra.mxu0 %v1301_v37  ;;  %v1371_v58 = vpop.permute.xlu1 %1370 }
 0x702   : > { %2423 = vmatprep.subr.msk.bf16.mxu0 %vm865_vm2, %v1377_v50  ;;  %v948_v50 = vsel %vm929_vm5, %v2882_v31, 0.0 }
 0x703   : > { %v1373_v62 = vpop.permute.xlu0 %1372 }
 0x705   : > { %v2514_v51 = vpop.eup %2513 }
 0x706   : > { %v1299_v56 = vpack.c.bf16 %v2514_v51, %v2514_v51  ;;  %v1295_v7 = vsel %vm929_vm5, %v2514_v51, 0.0  ;;  %v954_v51 = vsel %vm929_vm5, %v2880_v29, 0.0 }
 0x709   : > { %v2516_v52 = vpop.eup %2515 }
 0x70a   : > { %v1289_v24 = vsel %vm929_vm5, %v2516_v52, 0.0 }
 0x70b   : > { %v2518_v53 = vpop.eup %2517 }
 0x70c   : > { %v1298_v54 = vpack.c.bf16 %v2518_v53, %v2516_v52 }
 0x70e   : > { %2358 = vmatprep.mubr.msk.bf16.mxu0 %vm929_vm5, %v1298_v54 }
 0x70f   : > { %2359 = vmatmul.mubr.msk.bf16.vlgmr.msra.gmra.mxu0 %vm929_vm5, %v1299_v56 }
 0x710   : > { %2363 = vmatpush3.bf16.xpose.msra.mxu0 %v1388_v57  ;;  %2366 = vmatprep.mubr.msk.bf16.mxu0 %vm865_vm2, %v1371_v58 }
 0x711   : > { %2424 = vmatprep.subr.msk.bf16.mxu0 %vm865_vm2, %v1375_v59 }
 0x718   : > { %2365 = vmatpush3.bf16.xpose.msra.mxu0 %v1385_v61 }
 0x71f   : > { %2367 = vmatmul.mubr.msk.bf16.vlgmr.msra.gmra.mxu0 %vm865_vm2, %v1373_v62 }
 0x7cf   : > { %v2971_v63 = vpop.f32.mrf.mxu0 }
 0x7d1   : > { %v2973_v0 = vpop.f32.mrf.mxu0 }
 0x7d3   : > { %v2361_v1 = vpop.f32.mrf.mxu0 }
 0x7d5   : > { %v2975_v2 = vpop.f32.mrf.mxu0 }
 0x7df   : > { %v2368_v6 = vpop.f32.mrf.mxu0 }
 0x7e0   : > { %v1440_v11 = vsel %vm856_vm4, %v2368_v6, -1e+30 }
 0x7e1   : > { %v1424_v12 = vpop.f32.mrf.mxu0  ;;  %v1447_v13 = vsel %vm929_vm5, %v1440_v11, -inf }
 0x7e2   : > { %v1438_v14 = vsel %vm856_vm4, %v1424_v12, -1e+30  ;;  %1448 = vmax.xlane.f32.xlu0 %v1447_v13 }
 0x7e3   : > { %v2369_v15 = vpop.f32.mrf.mxu0  ;;  %v1441_v16 = vsel %vm929_vm5, %v1438_v14, -inf }
 0x7e4   : > { %1442 = vmax.xlane.f32.xlu1 %v1441_v16 }
 0x7e5   : > { %v1427_v17 = vpop.f32.mrf.mxu0 }
 0x7e6   : > { %v1439_v20 = vsel %vm856_vm4, %v1427_v17, -1e+30  ;;  %v2483_v17 = vld [vmem:[%s2761_s29 + $0x8] sm:$0xff]  }
 0x7e7   : > { %v1444_v22 = vsel %vm929_vm5, %v1439_v20, -inf }
 0x7e8   : > { %1445 = vmax.xlane.f32.xlu0 %v1444_v22 }
 0x7f5   : > { %1470 = vrot.lane.b32.xlu1 %v2846_v60, %s2617_s18 }
 0x7fe   : > { %1472 = vrot.lane.b32.xlu0 %v2843_v55, %s2617_s18  ;;  %v1292_v55 = vsel %vm929_vm5, %v2518_v53, 0.0 }
 0x819   : > { %1120 = vadd.xlane.f32.xlu1 %v1119_v23 }
 0x81d   : > { %1290 = vadd.xlane.f32.xlu1 %v1289_v24  ;;  %1123 = vadd.xlane.f32.xlu0 %v1122_v25 }
 0x821   : > { %1296 = vadd.xlane.f32.xlu1 %v1295_v7  ;;  %1126 = vadd.xlane.f32.xlu0 %v1125_v26 }
 0x825   : > { %1293 = vadd.xlane.f32.xlu0 %v1292_v55 }
 0x86b   : > { %v1449_v60 = vpop.xlane.xlu0 %1448 }
 0x86c   : > { %v1452_v9 = vsub.f32 %v1440_v11, %v1449_v60 }
 0x86d   : > { %v1443_v27 = vpop.xlane.xlu1 %1442 }
 0x86e   : > { %v1450_v28 = vsub.f32 %v1438_v14, %v1443_v27  ;;  %v1457_v30 = vmul.f32 1.442695, %v1452_v9 }
 0x870   : > { %v1453_v33 = vmul.f32 1.442695, %v1450_v28 }
 0x871   : > { %v1446_v34 = vpop.xlane.xlu0 %1445  ;;  %v1471_v37 = vpop.permute.xlu1 %1470 }
 0x872   : > { %2519 = vpow2.f32 %v1453_v33  ;;  %v1451_v10 = vsub.f32 %v1439_v20, %v1446_v34 }
 0x873   : > { %2521 = vpow2.f32 %v1457_v30 }
 0x874   : > { %v1455_v35 = vmul.f32 1.442695, %v1451_v10 }
 0x875   : > { %v1473_v36 = vpop.permute.xlu0 %1472 }
 0x876   : > { %2523 = vpow2.f32 %v1455_v35  ;;  %v1482_v8 = vsel %vm970_vm3, %v1473_v36, 0  ;;  %2425 = vmatprep.subr.msk.bf16.mxu1 %vm970_vm3, %v1473_v36 }
 0x877   : > { %2371 = vmatpush3.bf16.msra.mxu1 %v1482_v8 }
 0x878   : > { %2372 = vmatprep.subr.bf16.mxu1 %v1471_v37 }
 0x87b   : > { %2373 = vmatpush3.bf16.msra.mxu1 %v1471_v37 }
 0x87c   : > { %2378 = vmatprep.subr.bf16.mxu1 %v2483_v17 }
 0x87f   : > { %v2520_v38 = vpop.eup %2519 }
 0x880   : > { %v1459_v41 = vsel %vm929_vm5, %v2520_v38, 0.0  ;;  %v2522_v43 = vpop.eup %2521 }
 0x881   : > { %1460 = vadd.xlane.f32.xlu0 %v1459_v41  ;;  %v1465_v45 = vsel %vm929_vm5, %v2522_v43, 0.0  ;;  %v1469_v48 = vpack.c.bf16 %v2522_v43, %v2522_v43 }
 0x883   : > { %v2524_v44 = vpop.eup %2523 }
 0x884   : > { %v1462_v46 = vsel %vm929_vm5, %v2524_v44, 0.0  ;;  %v1468_v47 = vpack.c.bf16 %v2524_v44, %v2520_v38 }
 0x885   : > { %1466 = vadd.xlane.f32.xlu0 %v1465_v45  ;;  %1463 = vadd.xlane.f32.xlu1 %v1462_v46 }
 0x886   : > { %2374 = vmatprep.mubr.msk.bf16.mxu1 %vm929_vm5, %v1468_v47 }
 0x887   : > { %2375 = vmatmul.mubr.msk.bf16.vlgmr.msra.gmra.mxu1 %vm929_vm5, %v1469_v48 }
 0x888   : > { %2379 = vmatpush3.bf16.msra.mxu1 %v2483_v17 }
 0x889   : > { %952 = vadd.xlane.f32.xlu0 %v951_v49  ;;  %949 = vadd.xlane.f32.xlu1 %v948_v50 }
 0x88d   : > { %955 = vadd.xlane.f32.xlu1 %v954_v51 }
 0x8a2   : > { %v1121_v52 = vpop.xlane.xlu1 %1120 }
 0x8a3   : > { %2525 = vrcp.f32 %v1121_v52 }
 0x8a6   : > { %v1124_v53 = vpop.xlane.xlu0 %1123  ;;  %v1291_v54 = vpop.xlane.xlu1 %1290 }
 0x8a7   : > { %2527 = vrcp.f32 %v1124_v53 }
 0x8aa   : > { %v1127_v56 = vpop.xlane.xlu0 %1126  ;;  %v1297_v57 = vpop.xlane.xlu1 %1296 }
 0x8ab   : > { %2529 = vrcp.f32 %v1127_v56 }
 0x8ac   : > { %2531 = vrcp.f32 %v1291_v54  ;;  %v2222_v54 = vld [vmem:[%s3171_s17] ss:$0 sm:$0xff] }
 0x8ae   : > { %v1294_v58 = vpop.xlane.xlu0 %1293 }
 0x8af   : > { %2533 = vrcp.f32 %v1294_v58 }
 0x8b0   : > { %2535 = vrcp.f32 %v1297_v57  ;;  %v2526_v32 = vpop.eup %2525 }
 0x8b1   : > { %v1195_v59 = vmul.f32 %v2526_v32, %v2942_v19 }
 0x8b4   : > { %v2528_v31 = vpop.eup %2527 }
 0x8b5   : > { %v1196_v61 = vmul.f32 %v2528_v31, %v2944_v21 }
 0x8b7   : > { %v1198_v29 = vpack.c.bf16 %v1196_v61, %v1195_v59 }
 0x8b8   : > { %v2530_v62 = vpop.eup %2529 }
 0x8b9   : > { %v2532_v1 = vpop.eup %2531  ;;  %1542 = vrot.lane.b32.xlu0 %v1198_v29, %s2618_s27  ;;  %v1197_v6 = vmul.f32 %v2530_v62, %v2940_v18 }
 0x8ba   : > { %v1365_v14 = vmul.f32 %v2532_v1, %v2973_v0  ;;  %v2484_v0 = vld [vmem:[%s2761_s29] sm:$0xff]  }
 0x8bb   : > { %v1199_v12 = vpack.c.bf16 %v1197_v6, %v1197_v6  ;;  %2380 = vmatprep.subr.bf16.mxu1 %v2484_v0 }
 0x8bc   : > { %v2534_v11 = vpop.eup %2533  ;;  %2381 = vmatpush3.bf16.msra.mxu1 %v2484_v0 }
 0x8bd   : > { %v2536_v13 = vpop.eup %2535  ;;  %v1366_v15 = vmul.f32 %v2534_v11, %v2975_v2  ;;  %1544 = vrot.lane.b32.xlu1 %v1199_v12, %s2618_s27 }
 0x8be   : > { %v1367_v21 = vmul.f32 %v2536_v13, %v2971_v63 }
 0x8bf   : > { %v1368_v19 = vpack.c.bf16 %v1366_v15, %v1365_v14 }
 0x8c0   : > { %v1369_v16 = vpack.c.bf16 %v1367_v21, %v1367_v21 }
 0x8c1   : > { %1548 = vrot.lane.b32.xlu1 %v1368_v19, %s2619_s28 }
 0x8c5   : > { %1550 = vrot.lane.b32.xlu1 %v1369_v16, %s2619_s28  ;;  %s3176_s28 = sld [smem:[#allocation13_spill]] (!%p2243_p8) }
 0x90a   : > { %v1461_v18 = vpop.xlane.xlu0 %1460 }
 0x90e   : > { %v1467_v20 = vpop.xlane.xlu0 %1466  ;;  %v1464_v22 = vpop.xlane.xlu1 %1463 }
 0x90f   : > { %2537 = vrcp.f32 %v1467_v20 }
 0x910   : > { %2539 = vrcp.f32 %v1461_v18 }
 0x911   : > { %2541 = vrcp.f32 %v1464_v22 }
 0x912   : > { %v950_v30 = vpop.xlane.xlu1 %949  ;;  %v953_v33 = vpop.xlane.xlu0 %952 }
 0x913   : > { %2543 = vrcp.f32 %v950_v30 }
 0x914   : > { %2545 = vrcp.f32 %v953_v33  ;;  %v2227_v33 = vld [vmem:[%s3172_s14] ss:$0 sm:$0xff] }
 0x916   : > { %v956_v34 = vpop.xlane.xlu1 %955 }
 0x917   : > { %2547 = vrcp.f32 %v956_v34 }
 0x91c   : > { %v2538_v2 = vpop.eup %2537 }
 0x91d   : > { %v2540_v26 = vpop.eup %2539 }
 0x91e   : > { %v2542_v55 = vpop.eup %2541 }
 0x920   : > { %v2544_v35 = vpop.eup %2543 }
 0x921   : > { %v2546_v8 = vpop.eup %2545  ;;  %v1025_v38 = vmul.f32 %v2544_v35, %v2899_v40 }
 0x922   : > { %v1026_v41 = vmul.f32 %v2546_v8, %v2901_v42 }
 0x924   : > { %v2548_v37 = vpop.eup %2547  ;;  %v1028_v46 = vpack.c.bf16 %v1026_v41, %v1025_v38 }
 0x925   : > { %v1027_v43 = vmul.f32 %v2548_v37, %v2897_v39  ;;  %v2228_v37 = vld [vmem:[%s3173_s3] ss:$0 sm:$0xff] }
 0x927   : > { %v1029_v47 = vpack.c.bf16 %v1027_v43, %v1027_v43 }
 0x92b   : > { %v1543_v45 = vpop.permute.xlu0 %1542 }
 0x92c   : > { %v1560_v48 = vsel %vm865_vm2, %v1028_v46, %v1543_v45 }
 0x92f   : > { %v1545_v10 = vpop.permute.xlu1 %1544 }
 0x930   : > { %v1563_v50 = vsel %vm865_vm2, %v1029_v47, %v1545_v10 }
 0x933   : > { %v1549_v36 = vpop.permute.xlu1 %1548 }
 0x934   : > { %v1566_v51 = vsel %vm1564_vm6, %v1560_v48, %v1549_v36  ;;  %v2487_v48 = vld [vmem:[%s2792_s0 + $0x38] sm:$0xff]  }
 0x935   : > { %2394 = vmatprep.subr.bf16.mxu1 %v2487_v48 }
 0x937   : > { %v1551_v44 = vpop.permute.xlu1 %1550 }
 0x938   : > { %v1568_v53 = vsel %vm1564_vm6, %v1563_v50, %v1551_v44  ;;  %v2489_v50 = vld [vmem:[%s2792_s0 + $0x28] sm:$0xff]  }
 0x947   : > { %v2376_v23 = vpop.f32.mrf.mxu1 }
 0x948   : > { %v1537_v24 = vmul.f32 %v2538_v2, %v2376_v23  ;;  %v2485_v2 = vld [vmem:[%s2778_s19 + $0x8] sm:$0xff]   ;;  %v2486_v23 = vld [vmem:[%s2778_s19] sm:$0xff]  }
 0x949   : > { %v1518_v63 = vpop.f32.mrf.mxu1  ;;  %2386 = vmatprep.subr.bf16.mxu0 %v2485_v2 }
 0x94a   : > { %v1539_v25 = vpack.c.bf16 %v1537_v24, %v1537_v24  ;;  %v1535_v9 = vmul.f32 %v2540_v26, %v1518_v63  ;;  %2387 = vmatpush3.bf16.msra.mxu0 %v2485_v2 }
 0x94b   : > { %v2377_v7 = vpop.f32.mrf.mxu1  ;;  %2388 = vmatprep.subr.bf16.mxu0 %v2486_v23 }
 0x94c   : > { %1556 = vrot.lane.b32.xlu1 %v1539_v25, %s2620_s30 }
 0x94d   : > { %v1521_v60 = vpop.f32.mrf.mxu1 }
 0x94e   : > { %v1536_v27 = vmul.f32 %v2542_v55, %v1521_v60  ;;  %2389 = vmatpush3.bf16.msra.mxu0 %v2486_v23 }
 0x950   : > { %v1538_v28 = vpack.c.bf16 %v1536_v27, %v1535_v9 }
 0x952   : > { %1554 = vrot.lane.b32.xlu0 %v1538_v28, %s2620_s30 }
 0x9be   : > { %v1557_v49 = vpop.permute.xlu1 %1556 }
 0x9bf   : > { %v1572_v42 = vsel %vm929_vm5, %v1568_v53, %v1557_v49  ;;  %v2488_v49 = vld [vmem:[%s2792_s0 + $0x30] sm:$0xff]  }
 0x9c0   : > { %v2492_v53 = vld [vmem:[%s2792_s0 + $0x10] sm:$0xff]  }
 0x9c4   : > { %v1555_v52 = vpop.permute.xlu0 %1554 }
 0x9c5   : > { %v1570_v40 = vsel %vm929_vm5, %v1566_v51, %v1555_v52  ;;  %v2490_v51 = vld [vmem:[%s2792_s0 + $0x20] sm:$0xff]   ;;  %v2491_v52 = vld [vmem:[%s2792_s0 + $0x18] sm:$0xff]  }
 0x9c6   : > { %2382 = vmatprep.mubr.msk.bf16.mxu1 %vm716_vm1, %v1570_v40  ;;  %v2493_v40 = vld [vmem:[%s2792_s0 + $0x8] sm:$0xff]  }
 0x9c7   : > { %2383 = vmatmul.mubr.msk.bf16.vlgmr.msra.gmra.mxu1 %vm716_vm1, %v1572_v42  ;;  %v2494_v42 = vld [vmem:[%s2792_s0] sm:$0xff]  }
 0x9c8   : > { %2395 = vmatpush3.bf16.msra.mxu1 %v2487_v48 }
 0x9c9   : > { %2396 = vmatprep.subr.bf16.mxu1 %v2488_v49 }
 0x9cc   : > { %2397 = vmatpush3.bf16.msra.mxu1 %v2488_v49 }
 0x9cd   : > { %2398 = vmatprep.subr.bf16.mxu1 %v2489_v50 }
 0x9d0   : > { %2399 = vmatpush3.bf16.msra.mxu1 %v2489_v50 }
 0x9d1   : > { %2400 = vmatprep.subr.bf16.mxu1 %v2490_v51 }
 0x9d4   : > { %2401 = vmatpush3.bf16.msra.mxu1 %v2490_v51 }
 0x9d5   : > { %2402 = vmatprep.subr.bf16.mxu1 %v2491_v52 }
 0x9d8   : > { %2403 = vmatpush3.bf16.msra.mxu1 %v2491_v52 }
 0x9d9   : > { %2404 = vmatprep.subr.bf16.mxu1 %v2492_v53 }
 0x9dc   : > { %2405 = vmatpush3.bf16.msra.mxu1 %v2492_v53 }
 0x9dd   : > { %2406 = vmatprep.subr.bf16.mxu1 %v2493_v40 }
 0x9e0   : > { %2407 = vmatpush3.bf16.msra.mxu1 %v2493_v40 }
 0x9e1   : > { %2408 = vmatprep.subr.bf16.mxu1 %v2494_v42 }
 0x9e4   : > { %2409 = vmatpush3.bf16.msra.mxu1 %v2494_v42 }
 0xa87   : > { %v2384_v39 = vpop.f32.mrf.mxu1 }
 0xa88   : > { %v1643_v57 = vadd.f32 %v2384_v39, %v2222_v54  ;;  %v2229_v39 = vld [vmem:[%s685_s15] ss:$0 sm:$0xff] }
 0xa89   : > { %v1634_v56 = vpop.f32.mrf.mxu1 }
 0xa8a   : > { %v1635_v58 = vadd.f32 %v2222_v54, %v1634_v56  ;;  %v3036_v61 = vadd.f32 %v1643_v57, %v2807_v4 }
 0xa8b   : > { %v2385_v32 = vpop.f32.mrf.mxu1 }
 0xa8c   : > { %v3033_v31 = vadd.f32 %v1635_v58, %v2804_v3  ;;  %v1659_v11 = vsel %vm716_vm1, %v3036_v61, 0.0 }
 0xa8d   : > { %v1637_v59 = vpop.f32.mrf.mxu1 }
 0xa8e   : > { %v1638_v29 = vadd.f32 %v2222_v54, %v1637_v59  ;;  %v1653_v62 = vsel %vm716_vm1, %v3033_v31, 0.0 }
 0xa8f   : > { %1654 = vadd.xlane.f32.xlu0 %v1653_v62 }
 0xa90   : > { %v3041_v1 = vadd.f32 %v1638_v29, %v2810_v5 }
 0xa92   : > { %v1656_v6 = vsel %vm716_vm1, %v3041_v1, 0.0 }
 0xa93   : > { %1657 = vadd.xlane.f32.xlu1 %v1656_v6  ;;  %1660 = vadd.xlane.f32.xlu0 %v1659_v11 }
 0xb18   : > { %v1655_v3 = vpop.xlane.xlu0 %1654 }
 0xb19   : > { %v1662_v12 = vmul.f32 0.03125, %v1655_v3 }
 0xb1b   : > { %v1665_v4 = vsub.f32 %v3033_v31, %v1662_v12 }
 0xb1c   : > { %v1658_v13 = vpop.xlane.xlu1 %1657  ;;  %v1661_v14 = vpop.xlane.xlu0 %1660 }
 0xb1d   : > { %v1663_v15 = vmul.f32 0.03125, %v1658_v13  ;;  %v1664_v19 = vmul.f32 0.03125, %v1661_v14  ;;  %v1668_v5 = vmul.f32 %v1665_v4, %v1665_v4 }
 0xb1f   : > { %v1666_v21 = vsub.f32 %v3041_v1, %v1663_v15  ;;  %v1667_v16 = vsub.f32 %v3036_v61, %v1664_v19  ;;  %v1671_v17 = vsel %vm716_vm1, %v1668_v5, 0.0 }
 0xb20   : > { %1672 = vadd.xlane.f32.xlu0 %v1671_v17 }
 0xb21   : > { %v1669_v18 = vmul.f32 %v1666_v21, %v1666_v21  ;;  %v1670_v20 = vmul.f32 %v1667_v16, %v1667_v16 }
 0xb23   : > { %v1674_v22 = vsel %vm716_vm1, %v1669_v18, 0.0  ;;  %v1677_v0 = vsel %vm716_vm1, %v1670_v20, 0.0 }
 0xb24   : > { %1675 = vadd.xlane.f32.xlu0 %v1674_v22  ;;  %1678 = vadd.xlane.f32.xlu1 %v1677_v0  ;;  %v2234_v0 = vld [vmem:[%s693_s23] ss:$0 sm:$0xff] }
 0xba9   : > { %v1673_v24 = vpop.xlane.xlu0 %1672 }
 0xbaa   : > { %v1680_v63 = vmul.f32 0.03125, %v1673_v24 }
 0xbac   : > { %v1683_v25 = vadd.f32 1e-05, %v1680_v63 }
 0xbad   : > { %v1679_v7 = vpop.xlane.xlu1 %1678  ;;  %v1676_v26 = vpop.xlane.xlu0 %1675 }
 0xbae   : > { %2549 = vrsqrt.f32 %v1683_v25  ;;  %v1682_v55 = vmul.f32 0.03125, %v1679_v7  ;;  %v1681_v60 = vmul.f32 0.03125, %v1676_v26 }
 0xbb0   : > { %v1685_v9 = vadd.f32 1e-05, %v1682_v55  ;;  %v1684_v27 = vadd.f32 1e-05, %v1681_v60 }
 0xbb2   : > { %2551 = vrsqrt.f32 %v1685_v9 }
 0xbb3   : > { %2553 = vrsqrt.f32 %v1684_v27 }
 0xbbb   : > { %v2550_v28 = vpop.eup %2549 }
 0xbbc   : > { %v1689_v30 = vmul.f32 %v2550_v28, %v1665_v4 }
 0xbbe   : > { %v1698_v8 = vmul.f32 %v2227_v33, %v1689_v30 }
 0xbbf   : > { %v2552_v34 = vpop.eup %2551 }
 0xbc0   : > { %v2554_v10 = vpop.eup %2553  ;;  %v1691_v35 = vmul.f32 %v2552_v34, %v1667_v16  ;;  %v1707_v44 = vadd.f32 %v2228_v37, %v1698_v8 }
 0xbc1   : > { %v1690_v36 = vmul.f32 %v2554_v10, %v1666_v21 }
 0xbc2   : > { %v1700_v38 = vmul.f32 %v2227_v33, %v1691_v35 }
 0xbc3   : > { %v1699_v41 = vmul.f32 %v2227_v33, %v1690_v36 }
 0xbc4   : > { %v1709_v43 = vadd.f32 %v2228_v37, %v1700_v38 }
 0xbc5   : > { %v1708_v45 = vadd.f32 %v2228_v37, %v1699_v41 }
 0xbc6   : > { %v1711_v46 = vpack.c.bf16 %v1709_v43, %v1709_v43 }
 0xbc7   : > { %v1710_v47 = vpack.c.bf16 %v1708_v45, %v1707_v44 }
 0xbc9   : > { %2390 = vmatprep.mubr.msk.bf16.mxu0 %vm716_vm1, %v1710_v47 }
 0xbca   : > { %2391 = vmatmul.mubr.msk.bf16.vlgmr.msra.gmra.mxu0 %vm716_vm1, %v1711_v46 }
 0xc8a   : > { %v2392_v54 = vpop.f32.mrf.mxu0 }
 0xc8b   : > { %v1784_v56 = vadd.f32 %v2392_v54, %v2229_v39 }
 0xc8c   : > { %v1775_v57 = vpop.f32.mrf.mxu0 }
 0xc8d   : > { %v1794_v58 = vmul.f32 0.70710677, %v1784_v56  ;;  %v1776_v32 = vadd.f32 %v2229_v39, %v1775_v57  ;;  %v1791_v15 = vmul.f32 0.5, %v1784_v56 }
 0xc8e   : > { %v2393_v59 = vpop.f32.mrf.mxu0 }
 0xc8f   : > { %v1792_v29 = vmul.f32 0.70710677, %v1776_v32  ;;  %2555 = verf.f32 %v1794_v58  ;;  %v1789_v19 = vmul.f32 0.5, %v1776_v32 }
 0xc90   : > { %v1778_v62 = vpop.f32.mrf.mxu0 }
 0xc91   : > { %2557 = verf.f32 %v1792_v29  ;;  %v1779_v6 = vadd.f32 %v2229_v39, %v1778_v62 }
 0xc93   : > { %v1793_v11 = vmul.f32 0.70710677, %v1779_v6  ;;  %v1790_v5 = vmul.f32 0.5, %v1779_v6 }
 0xc95   : > { %2559 = verf.f32 %v1793_v11 }
 0xc9c   : > { %v2556_v3 = vpop.eup %2555 }
 0xc9d   : > { %v1800_v4 = vadd.f32 1.0, %v2556_v3 }
 0xc9e   : > { %v2558_v12 = vpop.eup %2557 }
 0xc9f   : > { %v1798_v13 = vadd.f32 1.0, %v2558_v12  ;;  %v1803_v16 = vmul.f32 %v1800_v4, %v1791_v15 }
 0xca1   : > { %v1801_v17 = vmul.f32 %v1798_v13, %v1789_v19  ;;  %v1805_v22 = vpack.c.bf16 %v1803_v16, %v1803_v16 }
 0xca2   : > { %v2560_v14 = vpop.eup %2559 }
 0xca3   : > { %v1799_v21 = vadd.f32 1.0, %v2560_v14 }
 0xca5   : > { %v1802_v18 = vmul.f32 %v1799_v21, %v1790_v5 }
 0xca7   : > { %v1804_v20 = vpack.c.bf16 %v1802_v18, %v1801_v17 }
 0xca9   : > { %2410 = vmatprep.mubr.bf16.mxu1 %v1804_v20 }
 0xcaa   : > { %2411 = vmatmul.mubr.bf16.vlgmr.msra.gmra.mxu1 %v1805_v22 }
 0xd6a   : > { %v2412_v2 = vpop.f32.mrf.mxu1 }
 0xd6b   : > { %v1920_v23 = vadd.f32 %v2412_v2, %v2234_v0 }
 0xd6c   : > { %v1911_v24 = vpop.f32.mrf.mxu1 }
 0xd6d   : > { %v1927_v63 = vadd.f32 %v1920_v23, %v3036_v61  ;;  %v1912_v25 = vadd.f32 %v2234_v0, %v1911_v24 }
 0xd6e   : > { %v2413_v7 = vpop.f32.mrf.mxu1 }
 0xd6f   : > { %1930 = vst.msk [vmem:[%s2797_s2 + $0x10] sm:$0xff] %vm716_vm1, %v1927_v63  ;;  %v1925_v26 = vadd.f32 %v1912_v25, %v3033_v31 }
 0xd70   : > { %v1914_v55 = vpop.f32.mrf.mxu1 }
 0xd71   : > { %1928 = vst.msk [vmem:[%s2797_s2] sm:$0xff] %vm716_vm1, %v1925_v26  ;;  %v1915_v60 = vadd.f32 %v2234_v0, %v1914_v55  ;;  %1934 = sbr.rel (%p2243_p8) target bundleno = 3760 (0xeb0), region = 88 }
 0xd73   : > { %v1926_v9 = vadd.f32 %v1915_v60, %v3041_v1 }
 0xd75   : > { %1929 = vst.msk [vmem:[%s2797_s2 + $0x8] sm:$0xff] %vm716_vm1, %v1926_v9 }
 0xd76   : > { %v1937_v27 = vsel %vm716_vm1, %v1925_v26, 0.0  ;;  %v1943_v61 = vsel %vm716_vm1, %v1927_v63, 0.0  ;;  %v1940_v28 = vsel %vm716_vm1, %v1926_v9, 0.0  ;;  %v2244_v39 = vld [vmem:[%s3175_s26] ss:$0 sm:$0xff] }
 0xd77   : > { %1938 = vadd.xlane.f32.xlu0 %v1937_v27  ;;  %1944 = vadd.xlane.f32.xlu1 %v1943_v61  ;;  %v2245_v56 = vld [vmem:[%s3176_s28] ss:$0 sm:$0xff] }
 0xd7b   : > { %1941 = vadd.xlane.f32.xlu0 %v1940_v28 }
 0xe00   : > { %v1939_v31 = vpop.xlane.xlu0 %1938  ;;  %v1945_v30 = vpop.xlane.xlu1 %1944 }
 0xe01   : > { %v1946_v33 = vmul.f32 0.03125, %v1939_v31  ;;  %v1948_v34 = vmul.f32 0.03125, %v1945_v30 }
 0xe03   : > { %v1949_v10 = vsub.f32 %v1925_v26, %v1946_v33  ;;  %v1951_v1 = vsub.f32 %v1927_v63, %v1948_v34 }
 0xe04   : > { %v1942_v35 = vpop.xlane.xlu0 %1941 }
 0xe05   : > { %v1947_v36 = vmul.f32 0.03125, %v1942_v35  ;;  %v1952_v8 = vmul.f32 %v1949_v10, %v1949_v10  ;;  %v1954_v37 = vmul.f32 %v1951_v1, %v1951_v1 }
 0xe07   : > { %v1950_v38 = vsub.f32 %v1926_v9, %v1947_v36  ;;  %v1955_v41 = vsel %vm716_vm1, %v1952_v8, 0.0  ;;  %v1961_v43 = vsel %vm716_vm1, %v1954_v37, 0.0 }
 0xe08   : > { %1956 = vadd.xlane.f32.xlu1 %v1955_v41 }
 0xe09   : > { %v1953_v44 = vmul.f32 %v1950_v38, %v1950_v38 }
 0xe0b   : > { %v1958_v45 = vsel %vm716_vm1, %v1953_v44, 0.0 }
 0xe0c   : > { %1962 = vadd.xlane.f32.xlu1 %v1961_v43  ;;  %1959 = vadd.xlane.f32.xlu0 %v1958_v45 }
 0xe91   : > { %v1957_v46 = vpop.xlane.xlu1 %1956 }
 0xe92   : > { %v1964_v47 = vmul.f32 0.03125, %v1957_v46 }
 0xe94   : > { %v1967_v48 = vadd.f32 1e-05, %v1964_v47 }
 0xe95   : > { %v1963_v49 = vpop.xlane.xlu1 %1962  ;;  %v1960_v50 = vpop.xlane.xlu0 %1959 }
 0xe96   : > { %2561 = vrsqrt.f32 %v1967_v48  ;;  %v1966_v51 = vmul.f32 0.03125, %v1963_v49  ;;  %v1965_v52 = vmul.f32 0.03125, %v1960_v50 }
 0xe98   : > { %v1969_v53 = vadd.f32 1e-05, %v1966_v51  ;;  %v1968_v40 = vadd.f32 1e-05, %v1965_v52 }
 0xe9a   : > { %2563 = vrsqrt.f32 %v1969_v53 }
 0xe9b   : > { %2565 = vrsqrt.f32 %v1968_v40 }
 0xea3   : > { %v2562_v42 = vpop.eup %2561 }
 0xea4   : > { %v1973_v54 = vmul.f32 %v2562_v42, %v1949_v10 }
 0xea6   : > { %v1982_v57 = vmul.f32 %v2244_v39, %v1973_v54 }
 0xea7   : > { %v2564_v58 = vpop.eup %2563 }
 0xea8   : > { %v2566_v32 = vpop.eup %2565  ;;  %v1991_v59 = vadd.f32 %v2245_v56, %v1982_v57  ;;  %v1975_v29 = vmul.f32 %v2564_v58, %v1951_v1 }
 0xea9   : > { %v1974_v62 = vmul.f32 %v2566_v32, %v1950_v38 }
 0xeaa   : > { %1994 = vst.msk [vmem:[%s2797_s2] sm:$0xff] %vm716_vm1, %v1991_v59  ;;  %v1984_v6 = vmul.f32 %v2244_v39, %v1975_v29 }
 0xeab   : > { %v1983_v11 = vmul.f32 %v2244_v39, %v1974_v62 }
 0xeac   : > { %v1993_v3 = vadd.f32 %v2245_v56, %v1984_v6 }
 0xead   : > { %v1992_v12 = vadd.f32 %v2245_v56, %v1983_v11 }
 0xeae   : > { %1996 = vst.msk [vmem:[%s2797_s2 + $0x10] sm:$0xff] %vm716_vm1, %v1993_v3 }
 0xeaf   : > { %1995 = vst.msk [vmem:[%s2797_s2 + $0x8] sm:$0xff] %vm716_vm1, %v1992_v12 }
 0xeb0 PF: > { %s3177_s30 = sld [smem:[#allocation5_spill]] }
 0xeb1   : > { %s3178_s18 = sld [smem:[#allocation3_spill]] }
 0xeb2   : > { %s3179_s19 = sld [smem:[#allocation4_spill]] }
 0xeb3   : > { %s3180_s20 = sld [smem:[#allocation6_spill]] }
 0xeb4   : > { %s3181_s21 = sld [smem:[#allocation7_spill]] }
 0xeb6   : > { %s25_s22 = sadd.s32 1, %s3177_s30  }
 0xeb7   : > { %p22_p9 = scmp.ge.s32.totalorder %s25_s22, 6  }
 0xeb9   :  { %24 = sbr.rel (!%p22_p9) target bundleno = 8 (0x8), region = 154 }

</bundles_post_ra>
